<compile_context>
chip_gen: v6e
topology: v6e:2x2x1
jax: 0.10.0
libtpu: 0.0.40
codegen_flags: <defaults>
</compile_context>

<pallas_src>
import functools

import jax
import jax.numpy as jnp
from jax.experimental import pallas as pl
from jax.experimental.pallas import tpu as pltpu

# SSD-style config (cfg.MODEL.BACKBONE.OUT_CHANNELS). output_channels[0] must be
# 1024 because bank1 (resnet50 children[:7]) ends with layer3 (1024 channels).
OUTPUT_CHANNELS = (1024, 512, 512, 256, 256, 256)
IMAGE_SIZE = 257          # smallest size for which all 6 banks have valid shapes
IMAGE_CHANNELS = 3
BATCH = 1

_MAX_A_BLOCK_ELEMS = 2 * 1024 * 1024     # ~4 MiB bf16 per A block (x2 buffers)
_VMEM_LIMIT = 32 * 1024 * 1024           # explicit scoped-VMEM budget (v5e/v6e/v7x safe)


def _round_up(x, m):
    return (x + m - 1) // m * m


def _pick_bn(n):
    if n % 256 == 0:
        return 256
    if n % 128 == 0:
        return 128
    return n                              # full-N block (e.g. Cout=64)


def _pick_bm(m, k, n_blocks):
    if m >= 3072:
        bm = 512
    elif m >= 1024:
        bm = 384
    elif m >= 512:
        bm = 256
    elif m > 64 and n_blocks == 1:
        # small GEMM with a single N block: split M in two so both v7x TCs get work
        bm = _round_up(-(-m // 2), 16)
    else:
        bm = m                            # single full-M block
    # keep the (double-buffered) A block comfortably inside VMEM
    while bm > 64 and bm * k > _MAX_A_BLOCK_ELEMS:
        bm = _round_up(bm // 2, 16)
    return bm


# ----------------------------------------------------------------------------
# Pallas kernels
# ----------------------------------------------------------------------------

def _gemm_bn_act_kernel(a_ref, b_ref, s_ref, c_ref, *rest,
                        relu_in, relu_out, has_identity):
    """o = act_out( act_in(A) @ B * scale + bias [+ identity] ), full-K, fp32 acc."""
    o_ref = rest[-1]
    a = a_ref[...]
    if relu_in:                              # ReLU fused on the input operand (banks 2-6)
        a = jnp.maximum(a, jnp.zeros_like(a))
    y = jnp.dot(a, b_ref[...], preferred_element_type=jnp.float32)
    y = y * s_ref[...] + c_ref[...]          # folded BatchNorm (fp32)
    if has_identity:                         # fused residual add (bottleneck conv3)
        y = y + rest[0][...].astype(jnp.float32)
    if relu_out:
        y = jnp.maximum(y, 0.0)
    o_ref[...] = y.astype(o_ref.dtype)


def _maxpool_v_kernel(x1_ref, x2_ref, o_ref, *, bh):
    # vertical max over 3 row-taps (stride 2): rows 2r, 2r+1 from x1,
    # row 2r+2 from x1 for r < bh-1 and from the x2 overlap row for the last r.
    for r in range(bh):
        a = x1_ref[0, 2 * r]
        b = x1_ref[0, 2 * r + 1]
        c = x1_ref[0, 2 * r + 2] if r + 1 < bh else x2_ref[0, 0]
        o_ref[0, r] = jnp.maximum(jnp.maximum(a, b), c)


# ----------------------------------------------------------------------------
# Pallas wrappers
# ----------------------------------------------------------------------------

def _gemm_bn_act(a, b, scale, bias, identity, relu_in, relu_out):
    m, k = a.shape
    n = b.shape[1]
    bn = _pick_bn(n)
    n_blocks = n // bn
    bm = _pick_bm(m, k, n_blocks)
    m_blocks = pl.cdiv(m, bm)

    in_specs = [
        pl.BlockSpec((bm, k), lambda i, j: (i, 0)),
        pl.BlockSpec((k, bn), lambda i, j: (0, j)),
        pl.BlockSpec((1, bn), lambda i, j: (0, j)),
        pl.BlockSpec((1, bn), lambda i, j: (0, j)),
    ]
    args = [a, b,
            scale.reshape(1, n).astype(jnp.float32),
            bias.reshape(1, n).astype(jnp.float32)]
    if identity is not None:
        in_specs.append(pl.BlockSpec((bm, bn), lambda i, j: (i, j)))
        args.append(identity)

    return pl.pallas_call(
        functools.partial(_gemm_bn_act_kernel, relu_in=relu_in,
                          relu_out=relu_out, has_identity=identity is not None),
        out_shape=jax.ShapeDtypeStruct((m, n), jnp.bfloat16),
        grid=(m_blocks, n_blocks),
        in_specs=in_specs,
        out_specs=pl.BlockSpec((bm, bn), lambda i, j: (i, j)),
        compiler_params=pltpu.CompilerParams(
            dimension_semantics=("parallel", "parallel"),
            vmem_limit_bytes=_VMEM_LIMIT),
    )(*args)


def _im2col(x, kh, kw, stride, pad):
    n, h, w, c = x.shape
    oh = (h + 2 * pad - kh) // stride + 1
    ow = (w + 2 * pad - kw) // stride + 1
    if kh == 1 and kw == 1 and stride == 1 and pad == 0:
        return x.reshape(n * h * w, c), oh, ow          # pure reshape, no copy pass
    xp = jnp.pad(x, ((0, 0), (pad, pad), (pad, pad), (0, 0))) if pad else x
    cols = []
    for i in range(kh):
        for j in range(kw):
            s = jax.lax.slice(
                xp, (0, i, j, 0),
                (n, i + (oh - 1) * stride + 1, j + (ow - 1) * stride + 1, c),
                (1, stride, stride, 1))
            cols.append(s)
    patches = cols[0] if len(cols) == 1 else jnp.concatenate(cols, axis=-1)
    return patches.reshape(n * oh * ow, kh * kw * c), oh, ow


@functools.partial(jax.jit, static_argnames=("kh", "kw", "stride", "pad",
                                             "relu_in", "relu_out"))
def conv_bn(x, w2d, scale, bias, identity, *, kh, kw, stride, pad,
            relu_in, relu_out):
    """Conv2d (+ folded BN) (+ optional input ReLU / residual add / output ReLU)."""
    n = x.shape[0]
    cout = w2d.shape[1]
    patches, oh, ow = _im2col(x, kh, kw, stride, pad)
    id2d = None if identity is None else identity.reshape(n * oh * ow, cout)
    y = _gemm_bn_act(patches, w2d, scale, bias, id2d, relu_in, relu_out)
    return y.reshape(n, oh, ow, cout)


@jax.jit
def maxpool_3x3_s2_p1(x):
    n, h, w, c = x.shape
    oh = (h - 1) // 2 + 1
    ow = (w - 1) // 2 + 1
    xp = jnp.pad(x, ((0, 0), (1, 1), (1, 1), (0, 0)), constant_values=-jnp.inf)
    # horizontal 3-tap max, fused by XLA (single read of xp, no 9x HBM stack)
    hmax = jnp.maximum(
        jnp.maximum(
            jax.lax.slice(xp, (0, 0, 0, 0), (n, h + 2, 2 * ow - 1, c), (1, 1, 2, 1)),
            jax.lax.slice(xp, (0, 0, 1, 0), (n, h + 2, 2 * ow, c), (1, 1, 2, 1))),
        jax.lax.slice(xp, (0, 0, 2, 0), (n, h + 2, 2 * ow + 1, c), (1, 1, 2, 1)))

    bh = 1
    for d in range(2, min(oh, 16) + 1):   # largest divisor of oh -> no ragged blocks
        if oh % d == 0:
            bh = d

    out = pl.pallas_call(
        functools.partial(_maxpool_v_kernel, bh=bh),
        out_shape=jax.ShapeDtypeStruct((n, oh, ow, c), x.dtype),
        grid=(n, oh // bh),
        in_specs=[
            pl.BlockSpec((1, 2 * bh, ow, c), lambda b, i: (b, i, 0, 0)),
            pl.BlockSpec((1, 1, ow, c), lambda b, i: (b, 2 * bh * (i + 1), 0, 0)),
        ],
        out_specs=pl.BlockSpec((1, bh, ow, c), lambda b, i: (b, i, 0, 0)),
        compiler_params=pltpu.CompilerParams(
            dimension_semantics=("parallel", "parallel"),
            vmem_limit_bytes=_VMEM_LIMIT),
    )(hmax, hmax)
    return out


# ----------------------------------------------------------------------------
# Deterministic parameter construction (synthetic stand-in for pretrained R50)
# ----------------------------------------------------------------------------

def _he2d(key, kh, kw, cin, cout):
    fan_in = kh * kw * cin
    w = (jax.random.normal(key, (kh, kw, cin, cout), jnp.float32)
         * jnp.sqrt(2.0 / fan_in))
    return w.reshape(kh * kw * cin, cout).astype(jnp.bfloat16)


def _bn_affine(key, c):
    # TODO(synk): BatchNorm is folded in inference form (running statistics);
    # training-mode batch statistics are not modeled.
    k1, k2, k3, k4 = jax.random.split(key, 4)
    gamma = 1.0 + 0.1 * jax.random.normal(k1, (c,), jnp.float32)
    beta = 0.1 * jax.random.normal(k2, (c,), jnp.float32)
    mean = 0.1 * jax.random.normal(k3, (c,), jnp.float32)
    var = 1.0 + 0.1 * jax.random.uniform(k4, (c,), jnp.float32)
    scale = gamma * jax.lax.rsqrt(var + 1e-5)
    bias = beta - mean * scale
    return scale, bias


def _bottleneck_params(nk, cin, width, stride, downsample):
    p = {"stride": stride, "w1": _he2d(nk(), 1, 1, cin, width)}
    p["s1"], p["b1"] = _bn_affine(nk(), width)
    p["w2"] = _he2d(nk(), 3, 3, width, width)
    p["s2"], p["b2"] = _bn_affine(nk(), width)
    p["w3"] = _he2d(nk(), 1, 1, width, width * 4)
    p["s3"], p["b3"] = _bn_affine(nk(), width * 4)
    if downsample:
        p["wd"] = _he2d(nk(), 1, 1, cin, width * 4)
        p["sd"], p["bd"] = _bn_affine(nk(), width * 4)
    return p


def make_params(seed=42):
    keys = iter(jax.random.split(jax.random.PRNGKey(seed), 256))
    nk = lambda: next(keys)
    P = {}
    P["conv1_w"] = _he2d(nk(), 7, 7, IMAGE_CHANNELS, 64)
    P["bn1_s"], P["bn1_b"] = _bn_affine(nk(), 64)
    # resnet50 layer1: 3 bottlenecks (64 -> 256), stride 1
    P["layer1"] = ([_bottleneck_params(nk, 64, 64, 1, True)] +
                   [_bottleneck_params(nk, 256, 64, 1, False) for _ in range(2)])
    # layer2: 4 bottlenecks (256 -> 512), first block stride 2
    P["layer2"] = ([_bottleneck_params(nk, 256, 128, 2, True)] +
                   [_bottleneck_params(nk, 512, 128, 1, False) for _ in range(3)])
    # layer3: 6 bottlenecks (512 -> 1024); SSD modification forces stride 1
    # on conv4_block1.conv2 and its downsample (and conv1, already stride 1).
    P["layer3"] = ([_bottleneck_params(nk, 512, 256, 1, True)] +
                   [_bottleneck_params(nk, 1024, 256, 1, False) for _ in range(5)])
    # banks 2-6: nn.Sequential(ReLU, Conv2d(k=3, bias=True))
    P["banks"] = []
    for i in range(5):
        w = _he2d(nk(), 3, 3, OUTPUT_CHANNELS[i], OUTPUT_CHANNELS[i + 1])
        b = 0.01 * jax.random.normal(nk(), (OUTPUT_CHANNELS[i + 1],), jnp.float32)
        P["banks"].append({"w": w, "b": b})
    return P


# ----------------------------------------------------------------------------
# Forward pass (matches Resnet50.forward: returns tuple of 6 feature maps)
# ----------------------------------------------------------------------------

def _bottleneck_forward(x, p):
    s = p["stride"]
    if "wd" in p:
        identity = conv_bn(x, p["wd"], p["sd"], p["bd"], None, kh=1, kw=1,
                           stride=s, pad=0, relu_in=False, relu_out=False)
    else:
        identity = x
    out = conv_bn(x, p["w1"], p["s1"], p["b1"], None, kh=1, kw=1, stride=1,
                  pad=0, relu_in=False, relu_out=True)
    out = conv_bn(out, p["w2"], p["s2"], p["b2"], None, kh=3, kw=3, stride=s,
                  pad=1, relu_in=False, relu_out=True)
    # residual add + ReLU fused into the conv3 GEMM epilogue
    out = conv_bn(out, p["w3"], p["s3"], p["b3"], identity, kh=1, kw=1,
                  stride=1, pad=0, relu_in=False, relu_out=True)
    return out


def resnet50_ssd_forward(x_nchw, P):
    # NCHW (PyTorch) -> NHWC bf16 (kernel layout)
    x = jnp.transpose(x_nchw, (0, 2, 3, 1)).astype(jnp.bfloat16)

    # bank1 = resnet50 children[:7] = conv1, bn1, relu, maxpool, layer1-3
    x = conv_bn(x, P["conv1_w"], P["bn1_s"], P["bn1_b"], None, kh=7, kw=7,
                stride=2, pad=3, relu_in=False, relu_out=True)
    x = maxpool_3x3_s2_p1(x)
    for blk in P["layer1"] + P["layer2"] + P["layer3"]:
        x = _bottleneck_forward(x, blk)
    feats = [x]

    # banks 2-6: x = Conv2d(ReLU(x)); ReLU fused into the GEMM input operand.
    strides = (2, 2, 2, 2, 1)
    pads = (1, 1, 1, 1, 0)
    for i, bank in enumerate(P["banks"]):
        ones = jnp.ones((bank["w"].shape[1],), jnp.float32)
        x = conv_bn(x, bank["w"], ones, bank["b"], None, kh=3, kw=3,
                    stride=strides[i], pad=pads[i],
                    relu_in=True, relu_out=False)
        feats.append(x)

    # back to NCHW fp32 to match PyTorch output conventions
    return tuple(jnp.transpose(f, (0, 3, 1, 2)).astype(jnp.float32)
                 for f in feats)


# ----------------------------------------------------------------------------

if __name__ == "__main__":
    x = jax.random.normal(jax.random.PRNGKey(0),
                          (BATCH, IMAGE_CHANNELS, IMAGE_SIZE, IMAGE_SIZE),
                          jnp.float32)
    params = make_params(seed=42)

    feats = resnet50_ssd_forward(x, params)
    feats = jax.block_until_ready(feats)

    expected = [(BATCH, 1024, 33, 33), (BATCH, 512, 17, 17),
                (BATCH, 512, 9, 9), (BATCH, 256, 5, 5),
                (BATCH, 256, 3, 3), (BATCH, 256, 1, 1)]
    assert [tuple(f.shape) for f in feats] == expected, \
        [tuple(f.shape) for f in feats]
    assert all(bool(jnp.all(jnp.isfinite(f))) for f in feats)

    print("KERNEL_OK")
</pallas_src>

<mosaic_0001>
module attributes {stable_mosaic.version = 11 : i64} {
  func.func @_gemm_bn_act_kernel(%arg0: i32, %arg1: i32, %arg2: memref<512x147xbf16, #tpu.memory_space<vmem>>, %arg3: memref<147x64xbf16, #tpu.memory_space<vmem>>, %arg4: memref<1x64xf32, #tpu.memory_space<vmem>>, %arg5: memref<1x64xf32, #tpu.memory_space<vmem>>, %arg6: memref<512x64xbf16, #tpu.memory_space<vmem>>) attributes {dimension_semantics = [#tpu.dimension_semantics<parallel>, #tpu.dimension_semantics<parallel>], iteration_bounds = array<i64: 33, 1>, scalar_prefetch = 0 : i64, scratch_operands = 0 : i64, tpu.core_type = #tpu.core_type<tc>, window_params = [{transform_indices = @transform_0, window_bounds = array<i64: 512, 147>}, {transform_indices = @transform_1, window_bounds = array<i64: 147, 64>}, {transform_indices = @transform_2, window_bounds = array<i64: 1, 64>}, {transform_indices = @transform_3, window_bounds = array<i64: 1, 64>}, {transform_indices = @transform_4, window_bounds = array<i64: 512, 64>}]} {
    %c0 = arith.constant 0 : index
    %c0_0 = arith.constant 0 : index
    %0 = vector.load %arg2[%c0, %c0_0] : memref<512x147xbf16, #tpu.memory_space<vmem>>, vector<512x147xbf16>
    %c0_1 = arith.constant 0 : index
    %c0_2 = arith.constant 0 : index
    %1 = vector.load %arg3[%c0_1, %c0_2] : memref<147x64xbf16, #tpu.memory_space<vmem>>, vector<147x64xbf16>
    %cst = arith.constant dense<0.000000e+00> : vector<512x64xf32>
    %2 = tpu.matmul %0, %1, %cst {dimension_numbers = #tpu.dot_dimension_numbers<[1], [0], [0], [1], [0, 0, 1, 1], [], []>} : vector<512x147xbf16>, vector<147x64xbf16>, vector<512x64xf32> -> vector<512x64xf32>
    %c0_3 = arith.constant 0 : index
    %c0_4 = arith.constant 0 : index
    %3 = vector.load %arg4[%c0_3, %c0_4] : memref<1x64xf32, #tpu.memory_space<vmem>>, vector<1x64xf32>
    %4 = vector.broadcast %3 : vector<1x64xf32> to vector<512x64xf32>
    %5 = arith.mulf %2, %4 : vector<512x64xf32>
    %c0_5 = arith.constant 0 : index
    %c0_6 = arith.constant 0 : index
    %6 = vector.load %arg5[%c0_5, %c0_6] : memref<1x64xf32, #tpu.memory_space<vmem>>, vector<1x64xf32>
    %7 = vector.broadcast %6 : vector<1x64xf32> to vector<512x64xf32>
    %8 = arith.addf %5, %7 : vector<512x64xf32>
    %cst_7 = arith.constant 0.000000e+00 : f32
    %9 = vector.broadcast %cst_7 : f32 to vector<512x64xf32>
    %10 = arith.maximumf %8, %9 : vector<512x64xf32>
    %11 = arith.truncf %10 : vector<512x64xf32> to vector<512x64xbf16>
    %c0_8 = arith.constant 0 : index
    %c0_9 = arith.constant 0 : index
    %12 = vector.load %arg6[%c0_8, %c0_9] : memref<512x64xbf16, #tpu.memory_space<vmem>>, vector<512x64xbf16>
    tpu.vector_store %arg6[%c0_8, %c0_9], %11 {strides = array<i32>} : memref<512x64xbf16, #tpu.memory_space<vmem>>, vector<512x64xbf16>,
    return
  }
  func.func @transform_0(%arg0: i32, %arg1: i32) -> (i32, i32) {
    %c0_i32 = arith.constant 0 : i32
    %c0_i32_0 = arith.constant 0 : i32
    return %arg0, %c0_i32 : i32, i32
  }
  func.func @transform_1(%arg0: i32, %arg1: i32) -> (i32, i32) {
    %c0_i32 = arith.constant 0 : i32
    %c0_i32_0 = arith.constant 0 : i32
    return %c0_i32, %arg1 : i32, i32
  }
  func.func @transform_2(%arg0: i32, %arg1: i32) -> (i32, i32) {
    %c0_i32 = arith.constant 0 : i32
    %c0_i32_0 = arith.constant 0 : i32
    return %c0_i32, %arg1 : i32, i32
  }
  func.func @transform_3(%arg0: i32, %arg1: i32) -> (i32, i32) {
    %c0_i32 = arith.constant 0 : i32
    %c0_i32_0 = arith.constant 0 : i32
    return %c0_i32, %arg1 : i32, i32
  }
  func.func @transform_4(%arg0: i32, %arg1: i32) -> (i32, i32) {
    %c0_i32 = arith.constant 0 : i32
    return %arg0, %arg1 : i32, i32
  }
}

</mosaic_0001>

<bundles_post_ra>
// kernel: conv_bn.1
= control target key start
LH: loop header
LB: loop body
LE: loop exit
PB: predicated region body
PF: predicated region fallthrough
CT: control target
= control target key end

     0   :  { %s2785_s15 = smov 0   ;;  %s2787_s16 = smov 0   ;;  %s3437_s0 = inlined_call_operand.vmem [shape: bf16[16641,147], index: 0, kind: input, shape index: {}]   ;;  %s3438_s1 = inlined_call_operand.vmem [shape: bf16[147,64], index: 1, kind: input, shape index: {}]   ;;  %s3439_s2 = inlined_call_operand.vmem [shape: f32[1,64], index: 2, kind: input, shape index: {}]   ;;  %s3440_s3 = inlined_call_operand.vmem [shape: f32[1,64], index: 3, kind: input, shape index: {}]   ;;  %s3441_s4 = inlined_call_operand.vmem [shape: bf16[16641,64], index: 4, kind: output, shape index: {}]  }
   0x1   :  { %s2789_s17 = smov 0   ;;  %s2791_s18 = smov 0  }
   0x2   :  { %s2793_s19 = smov 0  }
   0x3 LB: > { %s2153_s20 = sadd.s32 4294967295, %s2724_s19   ;;  %s26_s21 = sadd.s32 1, %s2720_s18  ;;  %s2724_s19 = sphi %s2793_s19, %s14_s19   ;;  %s2720_s18 = sphi %s2791_s18, %s3449_s18   ;;  %s2716_s17 = sphi %s2789_s17, %s3448_s17   ;;  %s2712_s16 = sphi %s2787_s16, %s3447_s16   ;;  %s2708_s15 = sphi %s2785_s15, %s3446_s15  }
   0x4   : > { %p28_p0 = scmp.ge.s32.totalorder %s26_s21, 33  ;;  %s139_s22 = sadd.s32 1, %s2712_s16 }
   0x5   : > { %p149_p1 = scmp.ne.s32.totalorder %s2712_s16, %s2708_s15  ;;  %p150_p2 = scmp.eq.s32.totalorder %s2153_s20, 32 }
   0x6   : > { %s3451_s21 = smov (%p28_p0, %s26_s21), 0  ;;  %p2160_p4 = scmp.ge.s32.totalorder %s2724_s19, 1 }
   0x7   : > { %p2817_p3 = por %p150_p2, %p149_p1  ;;  %s134_s24 = ssub.s32 %s2720_s18, %s3451_s21 }
   0x8   : > { %p213_p5 = scmp.lt.s32.totalorder %s2724_s19, 34  ;;  %p137_p6 = scmp.eq.s32.totalorder %s134_s24, 0 }
   0xa   : > { %p214_p7 = pnand %p2160_p4, %p213_p5 }
   0xb   : > { %s2826_s25 = scalar_select %p137_p6, %s2712_s16, %s139_s22  }
   0xc   : > { %217 = sbr.rel (%p214_p7) target bundleno = 466 (0x1d2), region = 36  ;;  %s2838_s6 = sshll.u32 (!%p214_p7), %s2716_s17, 6 }
   0xd   : > { %p260_p8 = scmp.lt.s32.totalorder (!%p214_p7), %s2838_s6, 2080  ;;  %s251_s11 = sand.u32 (!%p214_p7), 1, %s2708_s15  }
  0x11   : > { %v2548_v0 = vld [vmem:[%s3438_s1 + $0x38] sm:$0xff]   ;;  %v2758_v1 = vmov 0   ;;  %v2549_v2 = vld [vmem:[%s3438_s1 + $0x30] sm:$0xff]   ;;  %v2550_v3 = vld [vmem:[%s3438_s1 + $0x28] sm:$0xff]   ;;  %s261_s7 = scalar_select %p260_p8, %s2838_s6, 2080  ;;  %vm715_vm0 = vcmask 154624  }
  0x12   : > { %819 = vmatprep.subr.bf16.mxu0 %v2758_v1  ;;  %2422 = vmatprep.subr.bf16.mxu1 %v2758_v1  ;;  %v2551_v4 = vld [vmem:[%s3438_s1 + $0x20] sm:$0xff]   ;;  %v2552_v5 = vld [vmem:[%s3438_s1 + $0x18] sm:$0xff]   ;;  %v2553_v8 = vld [vmem:[%s3438_s1 + $0x10] sm:$0xff]   ;;  %vm812_vm1 = vcmask 1040384   ;;  %vm813_vm2 = vcmask 1041408   ;;  %v2759_v10 = vmov 65535  }
  0x13   : > { %820 = vmatpush1.bf16.msra.mxu0 %v2548_v0  ;;  %2432 = vmatpush1.bf16.msra.mxu1 %v2548_v0  ;;  %s2354_s10 = sshll.u32 %s261_s7, 3  ;;  %v2554_v9 = vld [vmem:[%s3438_s1 + $0x8] sm:$0xff]   ;;  %v814_v11 = vsel %vm812_vm1, 4294967295, %v2759_v10  ;;  %v2555_v12 = vld [vmem:[%s3438_s1] sm:$0xff]   ;;  %vm1570_vm3 = vcmask 519168   ;;  %s1643_s20 = ssub.s32 (%p2817_p3), 2081, %s2838_s6 }
  0x14   : > { %821 = vmatprep.subr.bf16.mxu0 %v2758_v1  ;;  %2423 = vmatprep.subr.bf16.mxu1 %v2758_v1  ;;  %s2848_s13 = scalar_lea.vmem %s3437_s0, %s2354_s10  ;;  %v2556_v13 = vld [vmem:[%s3438_s1 + $0x48] ss:$0 sps:$4 sm:$0x33]   ;;  %v815_v14 = vsel %vm813_vm2, %v814_v11, 0  ;;  %v2557_v16 = vld [vmem:[%s3438_s1 + $0x40] sm:$0xff]   ;;  %s2419_s22 = sshll.u32 (%p2817_p3), %s2716_s17, 8 }
  0x15   : > { %v2560_v6 = vld [vmem:[%s2848_s13 + $0x4] ss:$8 sps:$4 sm:$0xff]   ;;  %v817_v15 = vand.u32 %v2556_v13, %v815_v14  ;;  %v2558_v17 = vld [vmem:[%s2848_s13] ss:$8 sps:$4 sm:$0xff]   ;;  %v2564_v19 = vld [vmem:[%s2848_s13 + $0x14] ss:$8 sps:$4 sm:$0xff]   ;;  %s3240_s27 = scalar_lea.vmem (%p2817_p3), %s3441_s4, %s2419_s22  }
  0x16   : > { %v2563_v7 = vld [vmem:[%s2848_s13 + $0x104] ss:$8 sps:$4 sm:$0xff]   ;;  %2239 = vmatprep.mubr.msk.bf16.mxu0 %vm715_vm0, %v2560_v6  ;;  %v2561_v18 = vld [vmem:[%s2848_s13 + $0x100] ss:$8 sps:$4 sm:$0xff]   ;;  %v2566_v20 = vld [vmem:[%s2848_s13 + $0x114] ss:$8 sps:$4 sm:$0xff]  }
  0x17   : > { %822 = vmatpush1.bf16.msra.mxu0 %v2549_v2  ;;  %2433 = vmatpush1.bf16.msra.mxu1 %v2549_v2  ;;  %v2568_v21 = vld [vmem:[%s2848_s13 + $0x10] ss:$8 sps:$4 sm:$0xff]   ;;  %v2570_v23 = vld [vmem:[%s2848_s13 + $0x24] ss:$8 sps:$4 sm:$0xff]   ;;  %v2574_v25 = vld [vmem:[%s2848_s13 + $0x20] ss:$8 sps:$4 sm:$0xff]  }
  0x18   : > { %823 = vmatprep.subr.bf16.mxu0 %v2758_v1  ;;  %2424 = vmatprep.subr.bf16.mxu1 %v2758_v1  ;;  %v2569_v22 = vld [vmem:[%s2848_s13 + $0x110] ss:$8 sps:$4 sm:$0xff]   ;;  %v2572_v24 = vld [vmem:[%s2848_s13 + $0x124] ss:$8 sps:$4 sm:$0xff]   ;;  %v2575_v26 = vld [vmem:[%s2848_s13 + $0x120] ss:$8 sps:$4 sm:$0xff]  }
  0x19   : > { %2255 = vmatprep.mubr.msk.bf16.mxu1 %vm715_vm0, %v2563_v7  ;;  %v2576_v27 = vld [vmem:[%s2848_s13 + $0x34] ss:$8 sps:$4 sm:$0xff]   ;;  %v2580_v29 = vld [vmem:[%s2848_s13 + $0x30] ss:$8 sps:$4 sm:$0xff]   ;;  %v2582_v31 = vld [vmem:[%s2848_s13 + $0x44] ss:$8 sps:$4 sm:$0xff]  }
  0x1a   : > { %v2578_v28 = vld [vmem:[%s2848_s13 + $0x134] ss:$8 sps:$4 sm:$0xff]   ;;  %v2581_v30 = vld [vmem:[%s2848_s13 + $0x130] ss:$8 sps:$4 sm:$0xff]   ;;  %v2584_v32 = vld [vmem:[%s2848_s13 + $0x144] ss:$8 sps:$4 sm:$0xff]  }
  0x1b   : > { %824 = vmatpush1.bf16.msra.mxu0 %v2550_v3  ;;  %2434 = vmatpush1.bf16.msra.mxu1 %v2550_v3  ;;  %v2586_v33 = vld [vmem:[%s2848_s13 + $0x40] ss:$8 sps:$4 sm:$0xff]   ;;  %v2588_v35 = vld [vmem:[%s2848_s13 + $0x54] ss:$8 sps:$4 sm:$0xff]   ;;  %v2592_v37 = vld [vmem:[%s2848_s13 + $0x50] ss:$8 sps:$4 sm:$0xff]  }
  0x1c   : > { %825 = vmatprep.subr.bf16.mxu0 %v2758_v1  ;;  %2425 = vmatprep.subr.bf16.mxu1 %v2758_v1  ;;  %v2587_v34 = vld [vmem:[%s2848_s13 + $0x140] ss:$8 sps:$4 sm:$0xff]   ;;  %v2590_v36 = vld [vmem:[%s2848_s13 + $0x154] ss:$8 sps:$4 sm:$0xff]   ;;  %v2593_v38 = vld [vmem:[%s2848_s13 + $0x150] ss:$8 sps:$4 sm:$0xff]  }
  0x1d   : > { %v2594_v39 = vld [vmem:[%s2848_s13 + $0x64] ss:$8 sps:$4 sm:$0xff]   ;;  %v2598_v41 = vld [vmem:[%s2848_s13 + $0x60] ss:$8 sps:$4 sm:$0xff]   ;;  %v2600_v43 = vld [vmem:[%s2848_s13 + $0x74] ss:$8 sps:$4 sm:$0xff]  }
  0x1e   : > { %v2596_v40 = vld [vmem:[%s2848_s13 + $0x164] ss:$8 sps:$4 sm:$0xff]   ;;  %v2599_v42 = vld [vmem:[%s2848_s13 + $0x160] ss:$8 sps:$4 sm:$0xff]   ;;  %v2602_v44 = vld [vmem:[%s2848_s13 + $0x174] ss:$8 sps:$4 sm:$0xff]  }
  0x1f   : > { %826 = vmatpush1.bf16.msra.mxu0 %v2551_v4  ;;  %2435 = vmatpush1.bf16.msra.mxu1 %v2551_v4  ;;  %v2604_v45 = vld [vmem:[%s2848_s13 + $0x70] ss:$8 sps:$4 sm:$0xff]   ;;  %v2606_v47 = vld [vmem:[%s2848_s13 + $0x84] ss:$8 sps:$4 sm:$0xff]   ;;  %v2610_v49 = vld [vmem:[%s2848_s13 + $0x80] ss:$8 sps:$4 sm:$0xff]  }
  0x20   : > { %827 = vmatprep.subr.bf16.mxu0 %v2758_v1  ;;  %2426 = vmatprep.subr.bf16.mxu1 %v2758_v1  ;;  %v2605_v46 = vld [vmem:[%s2848_s13 + $0x170] ss:$8 sps:$4 sm:$0xff]   ;;  %v2608_v48 = vld [vmem:[%s2848_s13 + $0x184] ss:$8 sps:$4 sm:$0xff]   ;;  %v2611_v50 = vld [vmem:[%s2848_s13 + $0x180] ss:$8 sps:$4 sm:$0xff]  }
  0x21   : > { %v2612_v51 = vld [vmem:[%s2848_s13 + $0x94] ss:$8 sps:$4 sm:$0xff]   ;;  %v2616_v53 = vld [vmem:[%s2848_s13 + $0x90] ss:$8 sps:$4 sm:$0xff]   ;;  %v2618_v55 = vld [vmem:[%s2848_s13 + $0xa4] ss:$8 sps:$4 sm:$0xff]  }
  0x22   : > { %v2614_v52 = vld [vmem:[%s2848_s13 + $0x194] ss:$8 sps:$4 sm:$0xff]   ;;  %v2617_v54 = vld [vmem:[%s2848_s13 + $0x190] ss:$8 sps:$4 sm:$0xff]   ;;  %v2620_v56 = vld [vmem:[%s2848_s13 + $0x1a4] ss:$8 sps:$4 sm:$0xff]  }
  0x23   : > { %828 = vmatpush1.bf16.msra.mxu0 %v2552_v5  ;;  %2436 = vmatpush1.bf16.msra.mxu1 %v2552_v5  ;;  %v2622_v57 = vld [vmem:[%s2848_s13 + $0xa0] ss:$8 sps:$4 sm:$0xff]   ;;  %v2624_v59 = vld [vmem:[%s2848_s13 + $0xb4] ss:$8 sps:$4 sm:$0xff]   ;;  %v2628_v61 = vld [vmem:[%s2848_s13 + $0xb0] ss:$8 sps:$4 sm:$0xff]  }
  0x24   : > { %829 = vmatprep.subr.bf16.mxu0 %v2758_v1  ;;  %2427 = vmatprep.subr.bf16.mxu1 %v2758_v1  ;;  %v2623_v58 = vld [vmem:[%s2848_s13 + $0x1a0] ss:$8 sps:$4 sm:$0xff]   ;;  %v2626_v60 = vld [vmem:[%s2848_s13 + $0x1b4] ss:$8 sps:$4 sm:$0xff]   ;;  %v2629_v62 = vld [vmem:[%s2848_s13 + $0x1b0] ss:$8 sps:$4 sm:$0xff]  }
  0x25   : > { %v2630_v63 = vld [vmem:[%s2848_s13 + $0xc4] ss:$8 sps:$4 sm:$0xff]   ;;  %v2635_v2 = vld [vmem:[%s2848_s13 + $0x1c0] ss:$8 sps:$4 sm:$0xff]   ;;  %v2636_v3 = vld [vmem:[%s2848_s13 + $0xd4] ss:$8 sps:$4 sm:$0xff]  }
  0x26   : > { %v2632_v0 = vld [vmem:[%s2848_s13 + $0x1c4] ss:$8 sps:$4 sm:$0xff]   ;;  %v2638_v4 = vld [vmem:[%s2848_s13 + $0x1d4] ss:$8 sps:$4 sm:$0xff]   ;;  %v2640_v5 = vld [vmem:[%s2848_s13 + $0xd0] ss:$8 sps:$4 sm:$0xff]  }
  0x27   : > { %830 = vmatpush1.bf16.msra.mxu0 %v2553_v8  ;;  %2437 = vmatpush1.bf16.msra.mxu1 %v2553_v8  ;;  %v2641_v6 = vld [vmem:[%s2848_s13 + $0x1d0] ss:$8 sps:$4 sm:$0xff]   ;;  %v2642_v7 = vld [vmem:[%s2848_s13 + $0xe4] ss:$8 sps:$4 sm:$0xff]   ;;  %v2647_v10 = vld [vmem:[%s2848_s13 + $0x1e0] ss:$8 sps:$4 sm:$0xff]  }
  0x28   : > { %831 = vmatprep.subr.bf16.mxu0 %v2758_v1  ;;  %2428 = vmatprep.subr.bf16.mxu1 %v2758_v1  ;;  %v2644_v8 = vld [vmem:[%s2848_s13 + $0x1e4] ss:$8 sps:$4 sm:$0xff]   ;;  %v2648_v11 = vld [vmem:[%s2848_s13 + $0xf4] ss:$8 sps:$4 sm:$0xff]   ;;  %v2652_v13 = vld [vmem:[%s2848_s13 + $0xf0] ss:$8 sps:$4 sm:$0xff]  }
  0x29   : > { %v2653_v14 = vld [vmem:[%s2848_s13 + $0x1f0] ss:$8 sps:$4 sm:$0xff]   ;;  %p1644_p9 = scmp.lt.s32.totalorder (%p2817_p3), %s1643_s20, 64 }
  0x2b   : > { %832 = vmatpush1.bf16.msra.mxu0 %v2554_v9  ;;  %2438 = vmatpush1.bf16.msra.mxu1 %v2554_v9  ;;  %v2646_v9 = vld [vmem:[%s2848_s13 + $0xe0] ss:$8 sps:$4 sm:$0xff]  }
  0x2c   : > { %833 = vmatprep.subr.bf16.mxu0 %v2758_v1  ;;  %2429 = vmatprep.subr.bf16.mxu1 %v2758_v1 }
  0x2f   : > { %834 = vmatpush1.bf16.msra.mxu0 %v2555_v12  ;;  %2439 = vmatpush1.bf16.msra.mxu1 %v2555_v12  ;;  %v2650_v12 = vld [vmem:[%s2848_s13 + $0x1f4] ss:$8 sps:$4 sm:$0xff]  }
  0x30   : > { %847 = vmatprep.subr.bf16.mxu0 %v2758_v1  ;;  %2430 = vmatprep.subr.bf16.mxu1 %v2758_v1 }
  0x33   : > { %848 = vmatpush2.bf16.msra.mxu0 %v817_v15  ;;  %2440 = vmatpush2.bf16.msra.mxu1 %v817_v15  ;;  %v2967_v15 = vld [vmem:[%s3439_s2] ss:$0 sm:$0xff] }
  0x34   : > { %849 = vmatprep.subr.bf16.mxu0 %v2758_v1  ;;  %2431 = vmatprep.subr.bf16.mxu1 %v2758_v1  ;;  %v2634_v1 = vld [vmem:[%s2848_s13 + $0xc0] ss:$8 sps:$4 sm:$0xff]   ;;  %s2161_s13 = sshll.u32 %s251_s11, 8 }
  0x35   : > { %s2983_s15 = scalar_lea.vmem [#allocation2], %s2161_s13  }
  0x37   : > { %850 = vmatpush2.bf16.msra.mxu0 %v2557_v16  ;;  %2441 = vmatpush2.bf16.msra.mxu1 %v2557_v16 }
  0x3a   : > { %852 = vmatmul.mubr.bf16.vlgmr.msra.gmra.mxu0 %v2558_v17  ;;  %980 = vmatmul.mubr.bf16.vlgmr.msra.gmra.mxu1 %v2561_v18  ;;  %v2973_v17 = vld [vmem:[%s3440_s3] ss:$0 sm:$0xff] }
  0x3b   : > { %2240 = vmatprep.mubr.msk.bf16.mxu0 %vm715_vm0, %v2564_v19  ;;  %2256 = vmatprep.mubr.msk.bf16.mxu1 %vm715_vm0, %v2566_v20 }
  0x42   : > { %860 = vmatmul.mubr.bf16.gmra.mxu0 %v2568_v21  ;;  %988 = vmatmul.mubr.bf16.gmra.mxu1 %v2569_v22 }
  0x43   : > { %2241 = vmatprep.mubr.msk.bf16.mxu0 %vm715_vm0, %v2570_v23  ;;  %2257 = vmatprep.mubr.msk.bf16.mxu1 %vm715_vm0, %v2572_v24 }
  0x4a   : > { %868 = vmatmul.mubr.bf16.gmra.mxu0 %v2574_v25  ;;  %996 = vmatmul.mubr.bf16.gmra.mxu1 %v2575_v26 }
  0x4b   : > { %2242 = vmatprep.mubr.msk.bf16.mxu0 %vm715_vm0, %v2576_v27  ;;  %2258 = vmatprep.mubr.msk.bf16.mxu1 %vm715_vm0, %v2578_v28 }
  0x52   : > { %876 = vmatmul.mubr.bf16.gmra.mxu0 %v2580_v29  ;;  %1004 = vmatmul.mubr.bf16.gmra.mxu1 %v2581_v30 }
  0x53   : > { %2243 = vmatprep.mubr.msk.bf16.mxu0 %vm715_vm0, %v2582_v31  ;;  %2259 = vmatprep.mubr.msk.bf16.mxu1 %vm715_vm0, %v2584_v32 }
  0x5a   : > { %884 = vmatmul.mubr.bf16.gmra.mxu0 %v2586_v33  ;;  %1012 = vmatmul.mubr.bf16.gmra.mxu1 %v2587_v34 }
  0x5b   : > { %2244 = vmatprep.mubr.msk.bf16.mxu0 %vm715_vm0, %v2588_v35  ;;  %2260 = vmatprep.mubr.msk.bf16.mxu1 %vm715_vm0, %v2590_v36 }
  0x62   : > { %892 = vmatmul.mubr.bf16.gmra.mxu0 %v2592_v37  ;;  %1020 = vmatmul.mubr.bf16.gmra.mxu1 %v2593_v38 }
  0x63   : > { %2245 = vmatprep.mubr.msk.bf16.mxu0 %vm715_vm0, %v2594_v39  ;;  %2261 = vmatprep.mubr.msk.bf16.mxu1 %vm715_vm0, %v2596_v40 }
  0x6a   : > { %900 = vmatmul.mubr.bf16.gmra.mxu0 %v2598_v41  ;;  %1028 = vmatmul.mubr.bf16.gmra.mxu1 %v2599_v42 }
  0x6b   : > { %2246 = vmatprep.mubr.msk.bf16.mxu0 %vm715_vm0, %v2600_v43  ;;  %2262 = vmatprep.mubr.msk.bf16.mxu1 %vm715_vm0, %v2602_v44 }
  0x72   : > { %908 = vmatmul.mubr.bf16.gmra.mxu0 %v2604_v45  ;;  %1036 = vmatmul.mubr.bf16.gmra.mxu1 %v2605_v46 }
  0x73   : > { %2247 = vmatprep.mubr.msk.bf16.mxu0 %vm715_vm0, %v2606_v47  ;;  %2263 = vmatprep.mubr.msk.bf16.mxu1 %vm715_vm0, %v2608_v48 }
  0x7a   : > { %916 = vmatmul.mubr.bf16.gmra.mxu0 %v2610_v49  ;;  %1044 = vmatmul.mubr.bf16.gmra.mxu1 %v2611_v50 }
  0x7b   : > { %2248 = vmatprep.mubr.msk.bf16.mxu0 %vm715_vm0, %v2612_v51  ;;  %2264 = vmatprep.mubr.msk.bf16.mxu1 %vm715_vm0, %v2614_v52 }
  0x82   : > { %924 = vmatmul.mubr.bf16.gmra.mxu0 %v2616_v53  ;;  %1052 = vmatmul.mubr.bf16.gmra.mxu1 %v2617_v54 }
  0x83   : > { %2249 = vmatprep.mubr.msk.bf16.mxu0 %vm715_vm0, %v2618_v55  ;;  %2265 = vmatprep.mubr.msk.bf16.mxu1 %vm715_vm0, %v2620_v56 }
  0x8a   : > { %932 = vmatmul.mubr.bf16.gmra.mxu0 %v2622_v57  ;;  %1060 = vmatmul.mubr.bf16.gmra.mxu1 %v2623_v58 }
  0x8b   : > { %2250 = vmatprep.mubr.msk.bf16.mxu0 %vm715_vm0, %v2624_v59  ;;  %2266 = vmatprep.mubr.msk.bf16.mxu1 %vm715_vm0, %v2626_v60 }
  0x92   : > { %940 = vmatmul.mubr.bf16.gmra.mxu0 %v2628_v61  ;;  %1068 = vmatmul.mubr.bf16.gmra.mxu1 %v2629_v62 }
  0x93   : > { %2251 = vmatprep.mubr.msk.bf16.mxu0 %vm715_vm0, %v2630_v63  ;;  %2267 = vmatprep.mubr.msk.bf16.mxu1 %vm715_vm0, %v2632_v0 }
  0x9a   : > { %948 = vmatmul.mubr.bf16.gmra.mxu0 %v2634_v1  ;;  %1076 = vmatmul.mubr.bf16.gmra.mxu1 %v2635_v2 }
  0x9b   : > { %2252 = vmatprep.mubr.msk.bf16.mxu0 %vm715_vm0, %v2636_v3  ;;  %2268 = vmatprep.mubr.msk.bf16.mxu1 %vm715_vm0, %v2638_v4 }
  0xa2   : > { %956 = vmatmul.mubr.bf16.gmra.mxu0 %v2640_v5  ;;  %1084 = vmatmul.mubr.bf16.gmra.mxu1 %v2641_v6 }
  0xa3   : > { %2253 = vmatprep.mubr.msk.bf16.mxu0 %vm715_vm0, %v2642_v7  ;;  %2269 = vmatprep.mubr.msk.bf16.mxu1 %vm715_vm0, %v2644_v8 }
  0xaa   : > { %964 = vmatmul.mubr.bf16.gmra.mxu0 %v2646_v9  ;;  %1092 = vmatmul.mubr.bf16.gmra.mxu1 %v2647_v10 }
  0xab   : > { %2254 = vmatprep.mubr.msk.bf16.mxu0 %vm715_vm0, %v2648_v11  ;;  %2270 = vmatprep.mubr.msk.bf16.mxu1 %vm715_vm0, %v2650_v12 }
  0xb2   : > { %972 = vmatmul.mubr.bf16.gmra.mxu0 %v2652_v13  ;;  %1100 = vmatmul.mubr.bf16.gmra.mxu1 %v2653_v14 }
  0xfa   : > { %v853_v16 = vpop.f32.mrf.mxu0  ;;  %v981_v18 = vpop.f32.mrf.mxu1 }
  0xfb   : > { %v1115_v19 = vmul.f32 %v2967_v15, %v853_v16  ;;  %v1147_v20 = vmul.f32 %v2967_v15, %v981_v18 }
  0xfc   : > { %v855_v21 = vpop.f32.mrf.mxu0  ;;  %v983_v22 = vpop.f32.mrf.mxu1 }
  0xfd   : > { %v1186_v23 = vadd.f32 %v2973_v17, %v1115_v19  ;;  %v1218_v24 = vadd.f32 %v2973_v17, %v1147_v20 }
  0xfe   : > { %v856_v25 = vpop.f32.mrf.mxu0  ;;  %v984_v26 = vpop.f32.mrf.mxu1 }
  0xff   : > { %v1250_v27 = vmax.f32 %v1186_v23, 0.0  ;;  %v1282_v28 = vmax.f32 %v1218_v24, 0.0  ;;  %v1116_v29 = vmul.f32 %v2967_v15, %v856_v25  ;;  %v1148_v30 = vmul.f32 %v2967_v15, %v984_v26 }
 0x100   : > { %v858_v31 = vpop.f32.mrf.mxu0  ;;  %v986_v32 = vpop.f32.mrf.mxu1 }
 0x101   : > { %v2355_v33 = vpack.c.bf16 %v1250_v27, %v1250_v27  ;;  %v2387_v34 = vpack.c.bf16 %v1282_v28, %v1282_v28  ;;  %v1187_v35 = vadd.f32 %v2973_v17, %v1116_v29  ;;  %v1219_v36 = vadd.f32 %v2973_v17, %v1148_v30 }
 0x102   : > { %v861_v37 = vpop.f32.mrf.mxu0  ;;  %v989_v38 = vpop.f32.mrf.mxu1 }
 0x103   : > { %1571 = vst.msk [vmem:[%s2983_s15] sm:$0xf] %vm1570_vm3, %v2355_v33  ;;  %1603 = vst.msk [vmem:[%s2983_s15 + $0x80] sm:$0xf] %vm1570_vm3, %v2387_v34  ;;  %v1251_v39 = vmax.f32 %v1187_v35, 0.0  ;;  %v1283_v40 = vmax.f32 %v1219_v36, 0.0  ;;  %v1117_v41 = vmul.f32 %v2967_v15, %v861_v37  ;;  %v1149_v42 = vmul.f32 %v2967_v15, %v989_v38 }
 0x104   : > { %v863_v43 = vpop.f32.mrf.mxu0  ;;  %v991_v44 = vpop.f32.mrf.mxu1 }
 0x105   : > { %v2356_v45 = vpack.c.bf16 %v1251_v39, %v1251_v39  ;;  %v2388_v46 = vpack.c.bf16 %v1283_v40, %v1283_v40  ;;  %v1188_v47 = vadd.f32 %v2973_v17, %v1117_v41  ;;  %v1220_v48 = vadd.f32 %v2973_v17, %v1149_v42 }
 0x106   : > { %v864_v49 = vpop.f32.mrf.mxu0  ;;  %v992_v50 = vpop.f32.mrf.mxu1 }
 0x107   : > { %1572 = vst.msk [vmem:[%s2983_s15 + $0x4] sm:$0xf] %vm1570_vm3, %v2356_v45  ;;  %1604 = vst.msk [vmem:[%s2983_s15 + $0x84] sm:$0xf] %vm1570_vm3, %v2388_v46  ;;  %v1252_v51 = vmax.f32 %v1188_v47, 0.0  ;;  %v1284_v52 = vmax.f32 %v1220_v48, 0.0  ;;  %v1118_v53 = vmul.f32 %v2967_v15, %v864_v49  ;;  %v1150_v54 = vmul.f32 %v2967_v15, %v992_v50 }
 0x108   : > { %v866_v55 = vpop.f32.mrf.mxu0  ;;  %v994_v56 = vpop.f32.mrf.mxu1 }
 0x109   : > { %v2357_v57 = vpack.c.bf16 %v1252_v51, %v1252_v51  ;;  %v2389_v58 = vpack.c.bf16 %v1284_v52, %v1284_v52  ;;  %v1189_v59 = vadd.f32 %v2973_v17, %v1118_v53  ;;  %v1221_v60 = vadd.f32 %v2973_v17, %v1150_v54 }
 0x10a   : > { %v869_v61 = vpop.f32.mrf.mxu0  ;;  %v997_v62 = vpop.f32.mrf.mxu1 }
 0x10b   : > { %1573 = vst.msk [vmem:[%s2983_s15 + $0x8] sm:$0xf] %vm1570_vm3, %v2357_v57  ;;  %1605 = vst.msk [vmem:[%s2983_s15 + $0x88] sm:$0xf] %vm1570_vm3, %v2389_v58  ;;  %v1253_v63 = vmax.f32 %v1189_v59, 0.0  ;;  %v1285_v0 = vmax.f32 %v1221_v60, 0.0  ;;  %v1119_v1 = vmul.f32 %v2967_v15, %v869_v61  ;;  %v1151_v2 = vmul.f32 %v2967_v15, %v997_v62 }
 0x10c   : > { %v871_v3 = vpop.f32.mrf.mxu0  ;;  %v999_v4 = vpop.f32.mrf.mxu1 }
 0x10d   : > { %v2358_v5 = vpack.c.bf16 %v1253_v63, %v1253_v63  ;;  %v2390_v6 = vpack.c.bf16 %v1285_v0, %v1285_v0  ;;  %v1190_v7 = vadd.f32 %v2973_v17, %v1119_v1  ;;  %v1222_v8 = vadd.f32 %v2973_v17, %v1151_v2 }
 0x10e   : > { %v872_v9 = vpop.f32.mrf.mxu0  ;;  %v1000_v10 = vpop.f32.mrf.mxu1 }
 0x10f   : > { %1574 = vst.msk [vmem:[%s2983_s15 + $0xc] sm:$0xf] %vm1570_vm3, %v2358_v5  ;;  %1606 = vst.msk [vmem:[%s2983_s15 + $0x8c] sm:$0xf] %vm1570_vm3, %v2390_v6  ;;  %v1254_v11 = vmax.f32 %v1190_v7, 0.0  ;;  %v1286_v12 = vmax.f32 %v1222_v8, 0.0  ;;  %v1120_v13 = vmul.f32 %v2967_v15, %v872_v9  ;;  %v1152_v14 = vmul.f32 %v2967_v15, %v1000_v10 }
 0x110   : > { %v874_v16 = vpop.f32.mrf.mxu0  ;;  %v1002_v18 = vpop.f32.mrf.mxu1 }
 0x111   : > { %v2359_v19 = vpack.c.bf16 %v1254_v11, %v1254_v11  ;;  %v2391_v20 = vpack.c.bf16 %v1286_v12, %v1286_v12  ;;  %v1191_v21 = vadd.f32 %v2973_v17, %v1120_v13  ;;  %v1223_v22 = vadd.f32 %v2973_v17, %v1152_v14 }
 0x112   : > { %v877_v23 = vpop.f32.mrf.mxu0  ;;  %v1005_v24 = vpop.f32.mrf.mxu1 }
 0x113   : > { %1575 = vst.msk [vmem:[%s2983_s15 + $0x10] sm:$0xf] %vm1570_vm3, %v2359_v19  ;;  %1607 = vst.msk [vmem:[%s2983_s15 + $0x90] sm:$0xf] %vm1570_vm3, %v2391_v20  ;;  %v1255_v25 = vmax.f32 %v1191_v21, 0.0  ;;  %v1287_v26 = vmax.f32 %v1223_v22, 0.0  ;;  %v1121_v27 = vmul.f32 %v2967_v15, %v877_v23  ;;  %v1153_v28 = vmul.f32 %v2967_v15, %v1005_v24 }
 0x114   : > { %v879_v29 = vpop.f32.mrf.mxu0  ;;  %v1007_v30 = vpop.f32.mrf.mxu1 }
 0x115   : > { %v2360_v31 = vpack.c.bf16 %v1255_v25, %v1255_v25  ;;  %v2392_v32 = vpack.c.bf16 %v1287_v26, %v1287_v26  ;;  %v1192_v33 = vadd.f32 %v2973_v17, %v1121_v27  ;;  %v1224_v34 = vadd.f32 %v2973_v17, %v1153_v28 }
 0x116   : > { %v880_v35 = vpop.f32.mrf.mxu0  ;;  %v1008_v36 = vpop.f32.mrf.mxu1 }
 0x117   : > { %1576 = vst.msk [vmem:[%s2983_s15 + $0x14] sm:$0xf] %vm1570_vm3, %v2360_v31  ;;  %1608 = vst.msk [vmem:[%s2983_s15 + $0x94] sm:$0xf] %vm1570_vm3, %v2392_v32  ;;  %v1256_v37 = vmax.f32 %v1192_v33, 0.0  ;;  %v1288_v38 = vmax.f32 %v1224_v34, 0.0  ;;  %v1122_v39 = vmul.f32 %v2967_v15, %v880_v35  ;;  %v1154_v40 = vmul.f32 %v2967_v15, %v1008_v36 }
 0x118   : > { %v882_v41 = vpop.f32.mrf.mxu0  ;;  %v1010_v42 = vpop.f32.mrf.mxu1 }
 0x119   : > { %v2361_v43 = vpack.c.bf16 %v1256_v37, %v1256_v37  ;;  %v2393_v44 = vpack.c.bf16 %v1288_v38, %v1288_v38  ;;  %v1193_v45 = vadd.f32 %v2973_v17, %v1122_v39  ;;  %v1225_v46 = vadd.f32 %v2973_v17, %v1154_v40 }
 0x11a   : > { %v885_v47 = vpop.f32.mrf.mxu0  ;;  %v1013_v48 = vpop.f32.mrf.mxu1 }
 0x11b   : > { %1577 = vst.msk [vmem:[%s2983_s15 + $0x18] sm:$0xf] %vm1570_vm3, %v2361_v43  ;;  %1609 = vst.msk [vmem:[%s2983_s15 + $0x98] sm:$0xf] %vm1570_vm3, %v2393_v44  ;;  %v1257_v49 = vmax.f32 %v1193_v45, 0.0  ;;  %v1289_v50 = vmax.f32 %v1225_v46, 0.0  ;;  %v1123_v51 = vmul.f32 %v2967_v15, %v885_v47  ;;  %v1155_v52 = vmul.f32 %v2967_v15, %v1013_v48 }
 0x11c   : > { %v887_v53 = vpop.f32.mrf.mxu0  ;;  %v1015_v54 = vpop.f32.mrf.mxu1 }
 0x11d   : > { %v2362_v55 = vpack.c.bf16 %v1257_v49, %v1257_v49  ;;  %v2394_v56 = vpack.c.bf16 %v1289_v50, %v1289_v50  ;;  %v1194_v57 = vadd.f32 %v2973_v17, %v1123_v51  ;;  %v1226_v58 = vadd.f32 %v2973_v17, %v1155_v52 }
 0x11e   : > { %v888_v59 = vpop.f32.mrf.mxu0  ;;  %v1016_v60 = vpop.f32.mrf.mxu1 }
 0x11f   : > { %1578 = vst.msk [vmem:[%s2983_s15 + $0x1c] sm:$0xf] %vm1570_vm3, %v2362_v55  ;;  %1610 = vst.msk [vmem:[%s2983_s15 + $0x9c] sm:$0xf] %vm1570_vm3, %v2394_v56  ;;  %v1258_v61 = vmax.f32 %v1194_v57, 0.0  ;;  %v1290_v62 = vmax.f32 %v1226_v58, 0.0  ;;  %v1124_v63 = vmul.f32 %v2967_v15, %v888_v59  ;;  %v1156_v0 = vmul.f32 %v2967_v15, %v1016_v60 }
 0x120   : > { %v890_v1 = vpop.f32.mrf.mxu0  ;;  %v1018_v2 = vpop.f32.mrf.mxu1 }
 0x121   : > { %v2363_v3 = vpack.c.bf16 %v1258_v61, %v1258_v61  ;;  %v2395_v4 = vpack.c.bf16 %v1290_v62, %v1290_v62  ;;  %v1195_v5 = vadd.f32 %v2973_v17, %v1124_v63  ;;  %v1227_v6 = vadd.f32 %v2973_v17, %v1156_v0 }
 0x122   : > { %v893_v7 = vpop.f32.mrf.mxu0  ;;  %v1021_v8 = vpop.f32.mrf.mxu1 }
 0x123   : > { %1579 = vst.msk [vmem:[%s2983_s15 + $0x20] sm:$0xf] %vm1570_vm3, %v2363_v3  ;;  %1611 = vst.msk [vmem:[%s2983_s15 + $0xa0] sm:$0xf] %vm1570_vm3, %v2395_v4  ;;  %v1259_v9 = vmax.f32 %v1195_v5, 0.0  ;;  %v1291_v10 = vmax.f32 %v1227_v6, 0.0  ;;  %v1125_v11 = vmul.f32 %v2967_v15, %v893_v7  ;;  %v1157_v12 = vmul.f32 %v2967_v15, %v1021_v8 }
 0x124   : > { %v895_v13 = vpop.f32.mrf.mxu0  ;;  %v1023_v14 = vpop.f32.mrf.mxu1 }
 0x125   : > { %v2364_v16 = vpack.c.bf16 %v1259_v9, %v1259_v9  ;;  %v2396_v18 = vpack.c.bf16 %v1291_v10, %v1291_v10  ;;  %v1196_v19 = vadd.f32 %v2973_v17, %v1125_v11  ;;  %v1228_v20 = vadd.f32 %v2973_v17, %v1157_v12 }
 0x126   : > { %v896_v21 = vpop.f32.mrf.mxu0  ;;  %v1024_v22 = vpop.f32.mrf.mxu1 }
 0x127   : > { %1580 = vst.msk [vmem:[%s2983_s15 + $0x24] sm:$0xf] %vm1570_vm3, %v2364_v16  ;;  %1612 = vst.msk [vmem:[%s2983_s15 + $0xa4] sm:$0xf] %vm1570_vm3, %v2396_v18  ;;  %v1260_v23 = vmax.f32 %v1196_v19, 0.0  ;;  %v1292_v24 = vmax.f32 %v1228_v20, 0.0  ;;  %v1126_v25 = vmul.f32 %v2967_v15, %v896_v21  ;;  %v1158_v26 = vmul.f32 %v2967_v15, %v1024_v22 }
 0x128   : > { %v898_v27 = vpop.f32.mrf.mxu0  ;;  %v1026_v28 = vpop.f32.mrf.mxu1 }
 0x129   : > { %v2365_v29 = vpack.c.bf16 %v1260_v23, %v1260_v23  ;;  %v2397_v30 = vpack.c.bf16 %v1292_v24, %v1292_v24  ;;  %v1197_v31 = vadd.f32 %v2973_v17, %v1126_v25  ;;  %v1229_v32 = vadd.f32 %v2973_v17, %v1158_v26 }
 0x12a   : > { %v901_v33 = vpop.f32.mrf.mxu0  ;;  %v1029_v34 = vpop.f32.mrf.mxu1 }
 0x12b   : > { %1581 = vst.msk [vmem:[%s2983_s15 + $0x28] sm:$0xf] %vm1570_vm3, %v2365_v29  ;;  %1613 = vst.msk [vmem:[%s2983_s15 + $0xa8] sm:$0xf] %vm1570_vm3, %v2397_v30  ;;  %v1261_v35 = vmax.f32 %v1197_v31, 0.0  ;;  %v1293_v36 = vmax.f32 %v1229_v32, 0.0  ;;  %v1127_v37 = vmul.f32 %v2967_v15, %v901_v33  ;;  %v1159_v38 = vmul.f32 %v2967_v15, %v1029_v34 }
 0x12c   : > { %v903_v39 = vpop.f32.mrf.mxu0  ;;  %v1031_v40 = vpop.f32.mrf.mxu1 }
 0x12d   : > { %v2366_v41 = vpack.c.bf16 %v1261_v35, %v1261_v35  ;;  %v2398_v42 = vpack.c.bf16 %v1293_v36, %v1293_v36  ;;  %v1198_v43 = vadd.f32 %v2973_v17, %v1127_v37  ;;  %v1230_v44 = vadd.f32 %v2973_v17, %v1159_v38 }
 0x12e   : > { %v904_v45 = vpop.f32.mrf.mxu0  ;;  %v1032_v46 = vpop.f32.mrf.mxu1 }
 0x12f   : > { %1582 = vst.msk [vmem:[%s2983_s15 + $0x2c] sm:$0xf] %vm1570_vm3, %v2366_v41  ;;  %1614 = vst.msk [vmem:[%s2983_s15 + $0xac] sm:$0xf] %vm1570_vm3, %v2398_v42  ;;  %v1262_v47 = vmax.f32 %v1198_v43, 0.0  ;;  %v1294_v48 = vmax.f32 %v1230_v44, 0.0  ;;  %v1128_v49 = vmul.f32 %v2967_v15, %v904_v45  ;;  %v1160_v50 = vmul.f32 %v2967_v15, %v1032_v46 }
 0x130   : > { %v906_v51 = vpop.f32.mrf.mxu0  ;;  %v1034_v52 = vpop.f32.mrf.mxu1 }
 0x131   : > { %v2367_v53 = vpack.c.bf16 %v1262_v47, %v1262_v47  ;;  %v2399_v54 = vpack.c.bf16 %v1294_v48, %v1294_v48  ;;  %v1199_v55 = vadd.f32 %v2973_v17, %v1128_v49  ;;  %v1231_v56 = vadd.f32 %v2973_v17, %v1160_v50 }
 0x132   : > { %v909_v57 = vpop.f32.mrf.mxu0  ;;  %v1037_v58 = vpop.f32.mrf.mxu1 }
 0x133   : > { %1583 = vst.msk [vmem:[%s2983_s15 + $0x30] sm:$0xf] %vm1570_vm3, %v2367_v53  ;;  %1615 = vst.msk [vmem:[%s2983_s15 + $0xb0] sm:$0xf] %vm1570_vm3, %v2399_v54  ;;  %v1263_v59 = vmax.f32 %v1199_v55, 0.0  ;;  %v1295_v60 = vmax.f32 %v1231_v56, 0.0  ;;  %v1129_v61 = vmul.f32 %v2967_v15, %v909_v57  ;;  %v1161_v62 = vmul.f32 %v2967_v15, %v1037_v58 }
 0x134   : > { %v911_v63 = vpop.f32.mrf.mxu0  ;;  %v1039_v0 = vpop.f32.mrf.mxu1 }
 0x135   : > { %v2368_v1 = vpack.c.bf16 %v1263_v59, %v1263_v59  ;;  %v2400_v2 = vpack.c.bf16 %v1295_v60, %v1295_v60  ;;  %v1200_v3 = vadd.f32 %v2973_v17, %v1129_v61  ;;  %v1232_v4 = vadd.f32 %v2973_v17, %v1161_v62 }
 0x136   : > { %v912_v5 = vpop.f32.mrf.mxu0  ;;  %v1040_v6 = vpop.f32.mrf.mxu1 }
 0x137   : > { %1584 = vst.msk [vmem:[%s2983_s15 + $0x34] sm:$0xf] %vm1570_vm3, %v2368_v1  ;;  %1616 = vst.msk [vmem:[%s2983_s15 + $0xb4] sm:$0xf] %vm1570_vm3, %v2400_v2  ;;  %v1264_v7 = vmax.f32 %v1200_v3, 0.0  ;;  %v1296_v8 = vmax.f32 %v1232_v4, 0.0  ;;  %v1130_v9 = vmul.f32 %v2967_v15, %v912_v5  ;;  %v1162_v10 = vmul.f32 %v2967_v15, %v1040_v6 }
 0x138   : > { %v914_v11 = vpop.f32.mrf.mxu0  ;;  %v1042_v12 = vpop.f32.mrf.mxu1 }
 0x139   : > { %v2369_v13 = vpack.c.bf16 %v1264_v7, %v1264_v7  ;;  %v2401_v14 = vpack.c.bf16 %v1296_v8, %v1296_v8  ;;  %v1201_v16 = vadd.f32 %v2973_v17, %v1130_v9  ;;  %v1233_v18 = vadd.f32 %v2973_v17, %v1162_v10 }
 0x13a   : > { %v917_v19 = vpop.f32.mrf.mxu0  ;;  %v1045_v20 = vpop.f32.mrf.mxu1 }
 0x13b   : > { %1585 = vst.msk [vmem:[%s2983_s15 + $0x38] sm:$0xf] %vm1570_vm3, %v2369_v13  ;;  %1617 = vst.msk [vmem:[%s2983_s15 + $0xb8] sm:$0xf] %vm1570_vm3, %v2401_v14  ;;  %v1265_v21 = vmax.f32 %v1201_v16, 0.0  ;;  %v1297_v22 = vmax.f32 %v1233_v18, 0.0  ;;  %v1131_v23 = vmul.f32 %v2967_v15, %v917_v19  ;;  %v1163_v24 = vmul.f32 %v2967_v15, %v1045_v20 }
 0x13c   : > { %v919_v25 = vpop.f32.mrf.mxu0  ;;  %v1047_v26 = vpop.f32.mrf.mxu1 }
 0x13d   : > { %v2370_v27 = vpack.c.bf16 %v1265_v21, %v1265_v21  ;;  %v2402_v28 = vpack.c.bf16 %v1297_v22, %v1297_v22  ;;  %v1202_v29 = vadd.f32 %v2973_v17, %v1131_v23  ;;  %v1234_v30 = vadd.f32 %v2973_v17, %v1163_v24 }
 0x13e   : > { %v920_v31 = vpop.f32.mrf.mxu0  ;;  %v1048_v32 = vpop.f32.mrf.mxu1 }
 0x13f   : > { %1586 = vst.msk [vmem:[%s2983_s15 + $0x3c] sm:$0xf] %vm1570_vm3, %v2370_v27  ;;  %1618 = vst.msk [vmem:[%s2983_s15 + $0xbc] sm:$0xf] %vm1570_vm3, %v2402_v28  ;;  %v1266_v33 = vmax.f32 %v1202_v29, 0.0  ;;  %v1298_v34 = vmax.f32 %v1234_v30, 0.0  ;;  %v1132_v35 = vmul.f32 %v2967_v15, %v920_v31  ;;  %v1164_v36 = vmul.f32 %v2967_v15, %v1048_v32 }
 0x140   : > { %v922_v37 = vpop.f32.mrf.mxu0  ;;  %v1050_v38 = vpop.f32.mrf.mxu1 }
 0x141   : > { %v2371_v39 = vpack.c.bf16 %v1266_v33, %v1266_v33  ;;  %v2403_v40 = vpack.c.bf16 %v1298_v34, %v1298_v34  ;;  %v1203_v41 = vadd.f32 %v2973_v17, %v1132_v35  ;;  %v1235_v42 = vadd.f32 %v2973_v17, %v1164_v36 }
 0x142   : > { %v925_v43 = vpop.f32.mrf.mxu0  ;;  %v1053_v44 = vpop.f32.mrf.mxu1 }
 0x143   : > { %1587 = vst.msk [vmem:[%s2983_s15 + $0x40] sm:$0xf] %vm1570_vm3, %v2371_v39  ;;  %1619 = vst.msk [vmem:[%s2983_s15 + $0xc0] sm:$0xf] %vm1570_vm3, %v2403_v40  ;;  %v1267_v45 = vmax.f32 %v1203_v41, 0.0  ;;  %v1299_v46 = vmax.f32 %v1235_v42, 0.0  ;;  %v1133_v47 = vmul.f32 %v2967_v15, %v925_v43  ;;  %v1165_v48 = vmul.f32 %v2967_v15, %v1053_v44 }
 0x144   : > { %v927_v49 = vpop.f32.mrf.mxu0  ;;  %v1055_v50 = vpop.f32.mrf.mxu1 }
 0x145   : > { %v2372_v51 = vpack.c.bf16 %v1267_v45, %v1267_v45  ;;  %v2404_v52 = vpack.c.bf16 %v1299_v46, %v1299_v46  ;;  %v1204_v53 = vadd.f32 %v2973_v17, %v1133_v47  ;;  %v1236_v54 = vadd.f32 %v2973_v17, %v1165_v48 }
 0x146   : > { %v928_v55 = vpop.f32.mrf.mxu0  ;;  %v1056_v56 = vpop.f32.mrf.mxu1 }
 0x147   : > { %1588 = vst.msk [vmem:[%s2983_s15 + $0x44] sm:$0xf] %vm1570_vm3, %v2372_v51  ;;  %1620 = vst.msk [vmem:[%s2983_s15 + $0xc4] sm:$0xf] %vm1570_vm3, %v2404_v52  ;;  %v1268_v57 = vmax.f32 %v1204_v53, 0.0  ;;  %v1300_v58 = vmax.f32 %v1236_v54, 0.0  ;;  %v1134_v59 = vmul.f32 %v2967_v15, %v928_v55  ;;  %v1166_v60 = vmul.f32 %v2967_v15, %v1056_v56 }
 0x148   : > { %v930_v61 = vpop.f32.mrf.mxu0  ;;  %v1058_v62 = vpop.f32.mrf.mxu1 }
 0x149   : > { %v2373_v63 = vpack.c.bf16 %v1268_v57, %v1268_v57  ;;  %v2405_v0 = vpack.c.bf16 %v1300_v58, %v1300_v58  ;;  %v1205_v1 = vadd.f32 %v2973_v17, %v1134_v59  ;;  %v1237_v2 = vadd.f32 %v2973_v17, %v1166_v60 }
 0x14a   : > { %v933_v3 = vpop.f32.mrf.mxu0  ;;  %v1061_v4 = vpop.f32.mrf.mxu1 }
 0x14b   : > { %1589 = vst.msk [vmem:[%s2983_s15 + $0x48] sm:$0xf] %vm1570_vm3, %v2373_v63  ;;  %1621 = vst.msk [vmem:[%s2983_s15 + $0xc8] sm:$0xf] %vm1570_vm3, %v2405_v0  ;;  %v1269_v5 = vmax.f32 %v1205_v1, 0.0  ;;  %v1301_v6 = vmax.f32 %v1237_v2, 0.0  ;;  %v1135_v7 = vmul.f32 %v2967_v15, %v933_v3  ;;  %v1167_v8 = vmul.f32 %v2967_v15, %v1061_v4 }
 0x14c   : > { %v935_v9 = vpop.f32.mrf.mxu0  ;;  %v1063_v10 = vpop.f32.mrf.mxu1 }
 0x14d   : > { %v2374_v11 = vpack.c.bf16 %v1269_v5, %v1269_v5  ;;  %v2406_v12 = vpack.c.bf16 %v1301_v6, %v1301_v6  ;;  %v1206_v13 = vadd.f32 %v2973_v17, %v1135_v7  ;;  %v1238_v14 = vadd.f32 %v2973_v17, %v1167_v8 }
 0x14e   : > { %v936_v16 = vpop.f32.mrf.mxu0  ;;  %v1064_v18 = vpop.f32.mrf.mxu1 }
 0x14f   : > { %1590 = vst.msk [vmem:[%s2983_s15 + $0x4c] sm:$0xf] %vm1570_vm3, %v2374_v11  ;;  %1622 = vst.msk [vmem:[%s2983_s15 + $0xcc] sm:$0xf] %vm1570_vm3, %v2406_v12  ;;  %v1270_v19 = vmax.f32 %v1206_v13, 0.0  ;;  %v1302_v20 = vmax.f32 %v1238_v14, 0.0  ;;  %v1136_v21 = vmul.f32 %v2967_v15, %v936_v16  ;;  %v1168_v22 = vmul.f32 %v2967_v15, %v1064_v18 }
 0x150   : > { %v938_v23 = vpop.f32.mrf.mxu0  ;;  %v1066_v24 = vpop.f32.mrf.mxu1 }
 0x151   : > { %v2375_v25 = vpack.c.bf16 %v1270_v19, %v1270_v19  ;;  %v2407_v26 = vpack.c.bf16 %v1302_v20, %v1302_v20  ;;  %v1207_v27 = vadd.f32 %v2973_v17, %v1136_v21  ;;  %v1239_v28 = vadd.f32 %v2973_v17, %v1168_v22 }
 0x152   : > { %v941_v29 = vpop.f32.mrf.mxu0  ;;  %v1069_v30 = vpop.f32.mrf.mxu1 }
 0x153   : > { %1591 = vst.msk [vmem:[%s2983_s15 + $0x50] sm:$0xf] %vm1570_vm3, %v2375_v25  ;;  %1623 = vst.msk [vmem:[%s2983_s15 + $0xd0] sm:$0xf] %vm1570_vm3, %v2407_v26  ;;  %v1271_v31 = vmax.f32 %v1207_v27, 0.0  ;;  %v1303_v32 = vmax.f32 %v1239_v28, 0.0  ;;  %v1137_v33 = vmul.f32 %v2967_v15, %v941_v29  ;;  %v1169_v34 = vmul.f32 %v2967_v15, %v1069_v30 }
 0x154   : > { %v943_v35 = vpop.f32.mrf.mxu0  ;;  %v1071_v36 = vpop.f32.mrf.mxu1 }
 0x155   : > { %v2376_v37 = vpack.c.bf16 %v1271_v31, %v1271_v31  ;;  %v2408_v38 = vpack.c.bf16 %v1303_v32, %v1303_v32  ;;  %v1208_v39 = vadd.f32 %v2973_v17, %v1137_v33  ;;  %v1240_v40 = vadd.f32 %v2973_v17, %v1169_v34 }
 0x156   : > { %v944_v41 = vpop.f32.mrf.mxu0  ;;  %v1072_v42 = vpop.f32.mrf.mxu1 }
 0x157   : > { %1592 = vst.msk [vmem:[%s2983_s15 + $0x54] sm:$0xf] %vm1570_vm3, %v2376_v37  ;;  %1624 = vst.msk [vmem:[%s2983_s15 + $0xd4] sm:$0xf] %vm1570_vm3, %v2408_v38  ;;  %v1272_v43 = vmax.f32 %v1208_v39, 0.0  ;;  %v1304_v44 = vmax.f32 %v1240_v40, 0.0  ;;  %v1138_v45 = vmul.f32 %v2967_v15, %v944_v41  ;;  %v1170_v46 = vmul.f32 %v2967_v15, %v1072_v42 }
 0x158   : > { %v946_v47 = vpop.f32.mrf.mxu0  ;;  %v1074_v48 = vpop.f32.mrf.mxu1 }
 0x159   : > { %v2377_v49 = vpack.c.bf16 %v1272_v43, %v1272_v43  ;;  %v2409_v50 = vpack.c.bf16 %v1304_v44, %v1304_v44  ;;  %v1209_v51 = vadd.f32 %v2973_v17, %v1138_v45  ;;  %v1241_v52 = vadd.f32 %v2973_v17, %v1170_v46 }
 0x15a   : > { %v949_v53 = vpop.f32.mrf.mxu0  ;;  %v1077_v54 = vpop.f32.mrf.mxu1 }
 0x15b   : > { %1593 = vst.msk [vmem:[%s2983_s15 + $0x58] sm:$0xf] %vm1570_vm3, %v2377_v49  ;;  %1625 = vst.msk [vmem:[%s2983_s15 + $0xd8] sm:$0xf] %vm1570_vm3, %v2409_v50  ;;  %v1273_v55 = vmax.f32 %v1209_v51, 0.0  ;;  %v1305_v56 = vmax.f32 %v1241_v52, 0.0  ;;  %v1139_v57 = vmul.f32 %v2967_v15, %v949_v53  ;;  %v1171_v58 = vmul.f32 %v2967_v15, %v1077_v54 }
 0x15c   : > { %v951_v59 = vpop.f32.mrf.mxu0  ;;  %v1079_v60 = vpop.f32.mrf.mxu1 }
 0x15d   : > { %v2378_v61 = vpack.c.bf16 %v1273_v55, %v1273_v55  ;;  %v2410_v62 = vpack.c.bf16 %v1305_v56, %v1305_v56  ;;  %v1210_v63 = vadd.f32 %v2973_v17, %v1139_v57  ;;  %v1242_v0 = vadd.f32 %v2973_v17, %v1171_v58 }
 0x15e   : > { %v952_v1 = vpop.f32.mrf.mxu0  ;;  %v1080_v2 = vpop.f32.mrf.mxu1 }
 0x15f   : > { %1594 = vst.msk [vmem:[%s2983_s15 + $0x5c] sm:$0xf] %vm1570_vm3, %v2378_v61  ;;  %1626 = vst.msk [vmem:[%s2983_s15 + $0xdc] sm:$0xf] %vm1570_vm3, %v2410_v62  ;;  %v1274_v3 = vmax.f32 %v1210_v63, 0.0  ;;  %v1306_v4 = vmax.f32 %v1242_v0, 0.0  ;;  %v1140_v5 = vmul.f32 %v2967_v15, %v952_v1  ;;  %v1172_v6 = vmul.f32 %v2967_v15, %v1080_v2 }
 0x160   : > { %v954_v7 = vpop.f32.mrf.mxu0  ;;  %v1082_v8 = vpop.f32.mrf.mxu1 }
 0x161   : > { %v2379_v9 = vpack.c.bf16 %v1274_v3, %v1274_v3  ;;  %v2411_v10 = vpack.c.bf16 %v1306_v4, %v1306_v4  ;;  %v1211_v11 = vadd.f32 %v2973_v17, %v1140_v5  ;;  %v1243_v12 = vadd.f32 %v2973_v17, %v1172_v6 }
 0x162   : > { %v957_v13 = vpop.f32.mrf.mxu0  ;;  %v1085_v14 = vpop.f32.mrf.mxu1 }
 0x163   : > { %1595 = vst.msk [vmem:[%s2983_s15 + $0x60] sm:$0xf] %vm1570_vm3, %v2379_v9  ;;  %1627 = vst.msk [vmem:[%s2983_s15 + $0xe0] sm:$0xf] %vm1570_vm3, %v2411_v10  ;;  %v1275_v16 = vmax.f32 %v1211_v11, 0.0  ;;  %v1307_v18 = vmax.f32 %v1243_v12, 0.0  ;;  %v1141_v19 = vmul.f32 %v2967_v15, %v957_v13  ;;  %v1173_v20 = vmul.f32 %v2967_v15, %v1085_v14 }
 0x164   : > { %v959_v21 = vpop.f32.mrf.mxu0  ;;  %v1087_v22 = vpop.f32.mrf.mxu1 }
 0x165   : > { %v2380_v23 = vpack.c.bf16 %v1275_v16, %v1275_v16  ;;  %v2412_v24 = vpack.c.bf16 %v1307_v18, %v1307_v18  ;;  %v1212_v25 = vadd.f32 %v2973_v17, %v1141_v19  ;;  %v1244_v26 = vadd.f32 %v2973_v17, %v1173_v20 }
 0x166   : > { %v960_v27 = vpop.f32.mrf.mxu0  ;;  %v1088_v28 = vpop.f32.mrf.mxu1 }
 0x167   : > { %1596 = vst.msk [vmem:[%s2983_s15 + $0x64] sm:$0xf] %vm1570_vm3, %v2380_v23  ;;  %1628 = vst.msk [vmem:[%s2983_s15 + $0xe4] sm:$0xf] %vm1570_vm3, %v2412_v24  ;;  %v1276_v29 = vmax.f32 %v1212_v25, 0.0  ;;  %v1308_v30 = vmax.f32 %v1244_v26, 0.0  ;;  %v1142_v31 = vmul.f32 %v2967_v15, %v960_v27  ;;  %v1174_v32 = vmul.f32 %v2967_v15, %v1088_v28 }
 0x168   : > { %v962_v33 = vpop.f32.mrf.mxu0  ;;  %v1090_v34 = vpop.f32.mrf.mxu1 }
 0x169   : > { %v2381_v35 = vpack.c.bf16 %v1276_v29, %v1276_v29  ;;  %v2413_v36 = vpack.c.bf16 %v1308_v30, %v1308_v30  ;;  %v1213_v37 = vadd.f32 %v2973_v17, %v1142_v31  ;;  %v1245_v38 = vadd.f32 %v2973_v17, %v1174_v32 }
 0x16a   : > { %v965_v39 = vpop.f32.mrf.mxu0  ;;  %v1093_v40 = vpop.f32.mrf.mxu1 }
 0x16b   : > { %1597 = vst.msk [vmem:[%s2983_s15 + $0x68] sm:$0xf] %vm1570_vm3, %v2381_v35  ;;  %1629 = vst.msk [vmem:[%s2983_s15 + $0xe8] sm:$0xf] %vm1570_vm3, %v2413_v36  ;;  %v1277_v41 = vmax.f32 %v1213_v37, 0.0  ;;  %v1309_v42 = vmax.f32 %v1245_v38, 0.0  ;;  %v1143_v43 = vmul.f32 %v2967_v15, %v965_v39  ;;  %v1175_v44 = vmul.f32 %v2967_v15, %v1093_v40 }
 0x16c   : > { %v967_v45 = vpop.f32.mrf.mxu0  ;;  %v1095_v46 = vpop.f32.mrf.mxu1 }
 0x16d   : > { %v2382_v47 = vpack.c.bf16 %v1277_v41, %v1277_v41  ;;  %v2414_v48 = vpack.c.bf16 %v1309_v42, %v1309_v42  ;;  %v1214_v49 = vadd.f32 %v2973_v17, %v1143_v43  ;;  %v1246_v50 = vadd.f32 %v2973_v17, %v1175_v44 }
 0x16e   : > { %v968_v51 = vpop.f32.mrf.mxu0  ;;  %v1096_v52 = vpop.f32.mrf.mxu1 }
 0x16f   : > { %1598 = vst.msk [vmem:[%s2983_s15 + $0x6c] sm:$0xf] %vm1570_vm3, %v2382_v47  ;;  %1630 = vst.msk [vmem:[%s2983_s15 + $0xec] sm:$0xf] %vm1570_vm3, %v2414_v48  ;;  %v1278_v53 = vmax.f32 %v1214_v49, 0.0  ;;  %v1310_v54 = vmax.f32 %v1246_v50, 0.0  ;;  %v1144_v55 = vmul.f32 %v2967_v15, %v968_v51  ;;  %v1176_v56 = vmul.f32 %v2967_v15, %v1096_v52 }
 0x170   : > { %v970_v57 = vpop.f32.mrf.mxu0  ;;  %v1098_v58 = vpop.f32.mrf.mxu1 }
 0x171   : > { %v2383_v59 = vpack.c.bf16 %v1278_v53, %v1278_v53  ;;  %v2415_v60 = vpack.c.bf16 %v1310_v54, %v1310_v54  ;;  %v1215_v61 = vadd.f32 %v2973_v17, %v1144_v55  ;;  %v1247_v62 = vadd.f32 %v2973_v17, %v1176_v56 }
 0x172   : > { %v973_v63 = vpop.f32.mrf.mxu0  ;;  %v1101_v0 = vpop.f32.mrf.mxu1 }
 0x173   : > { %1599 = vst.msk [vmem:[%s2983_s15 + $0x70] sm:$0xf] %vm1570_vm3, %v2383_v59  ;;  %1631 = vst.msk [vmem:[%s2983_s15 + $0xf0] sm:$0xf] %vm1570_vm3, %v2415_v60  ;;  %v1279_v1 = vmax.f32 %v1215_v61, 0.0  ;;  %v1311_v2 = vmax.f32 %v1247_v62, 0.0  ;;  %v1145_v3 = vmul.f32 %v2967_v15, %v973_v63  ;;  %v1177_v4 = vmul.f32 %v2967_v15, %v1101_v0 }
 0x174   : > { %v975_v5 = vpop.f32.mrf.mxu0  ;;  %v1103_v6 = vpop.f32.mrf.mxu1 }
 0x175   : > { %v2384_v7 = vpack.c.bf16 %v1279_v1, %v1279_v1  ;;  %v2416_v8 = vpack.c.bf16 %v1311_v2, %v1311_v2  ;;  %v1216_v9 = vadd.f32 %v2973_v17, %v1145_v3  ;;  %v1248_v10 = vadd.f32 %v2973_v17, %v1177_v4 }
 0x176   : > { %v976_v11 = vpop.f32.mrf.mxu0  ;;  %v1104_v12 = vpop.f32.mrf.mxu1 }
 0x177   : > { %1600 = vst.msk [vmem:[%s2983_s15 + $0x74] sm:$0xf] %vm1570_vm3, %v2384_v7  ;;  %1632 = vst.msk [vmem:[%s2983_s15 + $0xf4] sm:$0xf] %vm1570_vm3, %v2416_v8  ;;  %v1280_v13 = vmax.f32 %v1216_v9, 0.0  ;;  %v1312_v14 = vmax.f32 %v1248_v10, 0.0  ;;  %v1146_v16 = vmul.f32 %v2967_v15, %v976_v11  ;;  %v1178_v18 = vmul.f32 %v2967_v15, %v1104_v12 }
 0x178   : > { %v978_v19 = vpop.f32.mrf.mxu0  ;;  %v1106_v20 = vpop.f32.mrf.mxu1 }
 0x179   : > { %v2385_v21 = vpack.c.bf16 %v1280_v13, %v1280_v13  ;;  %v2417_v22 = vpack.c.bf16 %v1312_v14, %v1312_v14  ;;  %v1217_v23 = vadd.f32 %v2973_v17, %v1146_v16  ;;  %v1249_v24 = vadd.f32 %v2973_v17, %v1178_v18 }
 0x17b   : > { %1601 = vst.msk [vmem:[%s2983_s15 + $0x78] sm:$0xf] %vm1570_vm3, %v2385_v21  ;;  %1633 = vst.msk [vmem:[%s2983_s15 + $0xf8] sm:$0xf] %vm1570_vm3, %v2417_v22  ;;  %v1281_v25 = vmax.f32 %v1217_v23, 0.0  ;;  %v1313_v26 = vmax.f32 %v1249_v24, 0.0 }
 0x17c   : > { %1641 = sbr.rel (!%p2817_p3) target bundleno = 466 (0x1d2), region = 40 }
 0x17d   : > { %v2386_v27 = vpack.c.bf16 %v1281_v25, %v1281_v25  ;;  %v2418_v28 = vpack.c.bf16 %v1313_v26, %v1313_v26 }
 0x17f   : > { %1602 = vst.msk [vmem:[%s2983_s15 + $0x7c] sm:$0xf] %vm1570_vm3, %v2386_v27  ;;  %1634 = vst.msk [vmem:[%s2983_s15 + $0xfc] sm:$0xf] %vm1570_vm3, %v2418_v28 }
 0x181   : > { %s3453_s20 = smov (!%p1644_p9, %s1643_s20), 64 }
 0x182   : > { %s2339_s28 = sshll.u32 %s3453_s20, 6 }
 0x183   : > { %p2342_p10 = scmp.eq.s32.totalorder %s2339_s28, 0 }
 0x184   : > { %s3246_s29 = sshrl.u32 (!%p2342_p10), %s3453_s20, 6 }
 0x185   : > { %1653 = sbr.rel (%p2342_p10) target bundleno = 466 (0x1d2), region = 44  ;;  %p2343_p11 = scmp.le.s32.totalorder (!%p2342_p10), %s3246_s29, 0 }
 0x18a   : > { %2074 = sbr.rel (%p2343_p11) target bundleno = 449 (0x1c1), region = 125  ;;  %s3443_s17 = smov (!%p2343_p11), %s3240_s27 }
 0x18b   : > { %s3444_s23 = smov (!%p2343_p11), %s2983_s15  ;;  %s3255_s6 = smov (!%p2343_p11), 0  }
 0x18c   : > { %s3257_s30 = smov (!%p2343_p11), 0  }
 0x18f LB: >> { %v1670_v15 = vld [vmem:[%s2732_s23] sm:$0xf]  ;;  %v1672_v17 = vld [vmem:[%s2732_s23 + $0x4] sm:$0xf]  ;;  %v1674_v29 = vld [vmem:[%s2732_s23 + $0x8] sm:$0xf]  ;;  %s2740_s30 = sphi %s3257_s30, %s1664_s30   ;;  %s2736_s6 = sphi %s3255_s6, %s3445_s6   ;;  %s2732_s23 = sphi %s3444_s23, %s1803_s23   ;;  %s2728_s17 = sphi %s3443_s17, %s1804_s17  }
 0x190   : >> { %1671 = vst [vmem:[%s2728_s17] sm:$0xf] %v1670_v15  ;;  %1673 = vst [vmem:[%s2728_s17 + $0x4] sm:$0xf] %v1672_v17  ;;  %v1676_v30 = vld [vmem:[%s2732_s23 + $0xc] sm:$0xf]  ;;  %s1798_s5 = sadd.s32 1, %s2736_s6 }
 0x191   : >> { %1675 = vst [vmem:[%s2728_s17 + $0x8] sm:$0xf] %v1674_v29  ;;  %v1678_v31 = vld [vmem:[%s2732_s23 + $0x10] sm:$0xf]  ;;  %v1680_v32 = vld [vmem:[%s2732_s23 + $0x14] sm:$0xf]  ;;  %p1799_p12 = scmp.ge.s32.totalorder %s1798_s5, %s3246_s29 }
 0x192   : >> { %1677 = vst [vmem:[%s2728_s17 + $0xc] sm:$0xf] %v1676_v30  ;;  %1679 = vst [vmem:[%s2728_s17 + $0x10] sm:$0xf] %v1678_v31  ;;  %v1682_v33 = vld [vmem:[%s2732_s23 + $0x18] sm:$0xf] }
 0x193   : >> { %1681 = vst [vmem:[%s2728_s17 + $0x14] sm:$0xf] %v1680_v32  ;;  %v1684_v34 = vld [vmem:[%s2732_s23 + $0x1c] sm:$0xf]  ;;  %v1686_v35 = vld [vmem:[%s2732_s23 + $0x20] sm:$0xf] }
 0x194   : >> { %1683 = vst [vmem:[%s2728_s17 + $0x18] sm:$0xf] %v1682_v33  ;;  %1685 = vst [vmem:[%s2728_s17 + $0x1c] sm:$0xf] %v1684_v34  ;;  %v1688_v36 = vld [vmem:[%s2732_s23 + $0x24] sm:$0xf] }
 0x195   : >> { %1687 = vst [vmem:[%s2728_s17 + $0x20] sm:$0xf] %v1686_v35  ;;  %v1690_v37 = vld [vmem:[%s2732_s23 + $0x28] sm:$0xf]  ;;  %v1692_v38 = vld [vmem:[%s2732_s23 + $0x2c] sm:$0xf] }
 0x196   : >> { %1689 = vst [vmem:[%s2728_s17 + $0x24] sm:$0xf] %v1688_v36  ;;  %1691 = vst [vmem:[%s2728_s17 + $0x28] sm:$0xf] %v1690_v37  ;;  %v1694_v39 = vld [vmem:[%s2732_s23 + $0x30] sm:$0xf] }
 0x197   : >> { %1693 = vst [vmem:[%s2728_s17 + $0x2c] sm:$0xf] %v1692_v38  ;;  %v1696_v40 = vld [vmem:[%s2732_s23 + $0x34] sm:$0xf]  ;;  %v1698_v41 = vld [vmem:[%s2732_s23 + $0x38] sm:$0xf] }
 0x198   : >> { %1695 = vst [vmem:[%s2728_s17 + $0x30] sm:$0xf] %v1694_v39  ;;  %1697 = vst [vmem:[%s2728_s17 + $0x34] sm:$0xf] %v1696_v40  ;;  %v1700_v42 = vld [vmem:[%s2732_s23 + $0x3c] sm:$0xf] }
 0x199   : >> { %1699 = vst [vmem:[%s2728_s17 + $0x38] sm:$0xf] %v1698_v41  ;;  %v1702_v43 = vld [vmem:[%s2732_s23 + $0x40] sm:$0xf]  ;;  %v1704_v44 = vld [vmem:[%s2732_s23 + $0x44] sm:$0xf] }
 0x19a   : >> { %1701 = vst [vmem:[%s2728_s17 + $0x3c] sm:$0xf] %v1700_v42  ;;  %1703 = vst [vmem:[%s2728_s17 + $0x40] sm:$0xf] %v1702_v43  ;;  %v1706_v45 = vld [vmem:[%s2732_s23 + $0x48] sm:$0xf] }
 0x19b   : >> { %1705 = vst [vmem:[%s2728_s17 + $0x44] sm:$0xf] %v1704_v44  ;;  %v1708_v46 = vld [vmem:[%s2732_s23 + $0x4c] sm:$0xf]  ;;  %v1710_v47 = vld [vmem:[%s2732_s23 + $0x50] sm:$0xf] }
 0x19c   : >> { %1707 = vst [vmem:[%s2728_s17 + $0x48] sm:$0xf] %v1706_v45  ;;  %1709 = vst [vmem:[%s2728_s17 + $0x4c] sm:$0xf] %v1708_v46  ;;  %v1712_v48 = vld [vmem:[%s2732_s23 + $0x54] sm:$0xf] }
 0x19d   : >> { %1711 = vst [vmem:[%s2728_s17 + $0x50] sm:$0xf] %v1710_v47  ;;  %v1714_v49 = vld [vmem:[%s2732_s23 + $0x58] sm:$0xf]  ;;  %v1716_v50 = vld [vmem:[%s2732_s23 + $0x5c] sm:$0xf] }
 0x19e   : >> { %1713 = vst [vmem:[%s2728_s17 + $0x54] sm:$0xf] %v1712_v48  ;;  %1715 = vst [vmem:[%s2728_s17 + $0x58] sm:$0xf] %v1714_v49  ;;  %v1718_v51 = vld [vmem:[%s2732_s23 + $0x60] sm:$0xf] }
 0x19f   : >> { %1717 = vst [vmem:[%s2728_s17 + $0x5c] sm:$0xf] %v1716_v50  ;;  %v1720_v52 = vld [vmem:[%s2732_s23 + $0x64] sm:$0xf]  ;;  %v1722_v53 = vld [vmem:[%s2732_s23 + $0x68] sm:$0xf] }
 0x1a0   : >> { %1719 = vst [vmem:[%s2728_s17 + $0x60] sm:$0xf] %v1718_v51  ;;  %1721 = vst [vmem:[%s2728_s17 + $0x64] sm:$0xf] %v1720_v52  ;;  %v1724_v54 = vld [vmem:[%s2732_s23 + $0x6c] sm:$0xf] }
 0x1a1   : >> { %1723 = vst [vmem:[%s2728_s17 + $0x68] sm:$0xf] %v1722_v53  ;;  %v1726_v55 = vld [vmem:[%s2732_s23 + $0x70] sm:$0xf]  ;;  %v1728_v56 = vld [vmem:[%s2732_s23 + $0x74] sm:$0xf] }
 0x1a2   : >> { %1725 = vst [vmem:[%s2728_s17 + $0x6c] sm:$0xf] %v1724_v54  ;;  %1727 = vst [vmem:[%s2728_s17 + $0x70] sm:$0xf] %v1726_v55  ;;  %v1730_v57 = vld [vmem:[%s2732_s23 + $0x78] sm:$0xf] }
 0x1a3   : >> { %1729 = vst [vmem:[%s2728_s17 + $0x74] sm:$0xf] %v1728_v56  ;;  %v1732_v58 = vld [vmem:[%s2732_s23 + $0x7c] sm:$0xf]  ;;  %v1734_v59 = vld [vmem:[%s2732_s23 + $0x80] sm:$0xf] }
 0x1a4   : >> { %1731 = vst [vmem:[%s2728_s17 + $0x78] sm:$0xf] %v1730_v57  ;;  %1733 = vst [vmem:[%s2728_s17 + $0x7c] sm:$0xf] %v1732_v58  ;;  %v1736_v60 = vld [vmem:[%s2732_s23 + $0x84] sm:$0xf] }
 0x1a5   : >> { %1735 = vst [vmem:[%s2728_s17 + $0x80] sm:$0xf] %v1734_v59  ;;  %v1738_v61 = vld [vmem:[%s2732_s23 + $0x88] sm:$0xf]  ;;  %v1740_v62 = vld [vmem:[%s2732_s23 + $0x8c] sm:$0xf] }
 0x1a6   : >> { %1737 = vst [vmem:[%s2728_s17 + $0x84] sm:$0xf] %v1736_v60  ;;  %1739 = vst [vmem:[%s2728_s17 + $0x88] sm:$0xf] %v1738_v61  ;;  %v1742_v63 = vld [vmem:[%s2732_s23 + $0x90] sm:$0xf] }
 0x1a7   : >> { %1741 = vst [vmem:[%s2728_s17 + $0x8c] sm:$0xf] %v1740_v62  ;;  %v1744_v0 = vld [vmem:[%s2732_s23 + $0x94] sm:$0xf]  ;;  %v1746_v1 = vld [vmem:[%s2732_s23 + $0x98] sm:$0xf] }
 0x1a8   : >> { %1743 = vst [vmem:[%s2728_s17 + $0x90] sm:$0xf] %v1742_v63  ;;  %1745 = vst [vmem:[%s2728_s17 + $0x94] sm:$0xf] %v1744_v0  ;;  %v1748_v2 = vld [vmem:[%s2732_s23 + $0x9c] sm:$0xf] }
 0x1a9   : >> { %1747 = vst [vmem:[%s2728_s17 + $0x98] sm:$0xf] %v1746_v1  ;;  %v1750_v3 = vld [vmem:[%s2732_s23 + $0xa0] sm:$0xf]  ;;  %v1752_v4 = vld [vmem:[%s2732_s23 + $0xa4] sm:$0xf] }
 0x1aa   : >> { %1749 = vst [vmem:[%s2728_s17 + $0x9c] sm:$0xf] %v1748_v2  ;;  %1751 = vst [vmem:[%s2728_s17 + $0xa0] sm:$0xf] %v1750_v3  ;;  %v1754_v5 = vld [vmem:[%s2732_s23 + $0xa8] sm:$0xf] }
 0x1ab   : >> { %1753 = vst [vmem:[%s2728_s17 + $0xa4] sm:$0xf] %v1752_v4  ;;  %v1756_v6 = vld [vmem:[%s2732_s23 + $0xac] sm:$0xf]  ;;  %v1758_v7 = vld [vmem:[%s2732_s23 + $0xb0] sm:$0xf] }
 0x1ac   : >> { %1755 = vst [vmem:[%s2728_s17 + $0xa8] sm:$0xf] %v1754_v5  ;;  %1757 = vst [vmem:[%s2728_s17 + $0xac] sm:$0xf] %v1756_v6  ;;  %v1760_v8 = vld [vmem:[%s2732_s23 + $0xb4] sm:$0xf] }
 0x1ad   : >> { %1759 = vst [vmem:[%s2728_s17 + $0xb0] sm:$0xf] %v1758_v7  ;;  %v1762_v9 = vld [vmem:[%s2732_s23 + $0xb8] sm:$0xf]  ;;  %v1764_v10 = vld [vmem:[%s2732_s23 + $0xbc] sm:$0xf] }
 0x1ae   : >> { %1761 = vst [vmem:[%s2728_s17 + $0xb4] sm:$0xf] %v1760_v8  ;;  %1763 = vst [vmem:[%s2728_s17 + $0xb8] sm:$0xf] %v1762_v9  ;;  %v1766_v11 = vld [vmem:[%s2732_s23 + $0xc0] sm:$0xf] }
 0x1af   : >> { %1765 = vst [vmem:[%s2728_s17 + $0xbc] sm:$0xf] %v1764_v10  ;;  %v1768_v12 = vld [vmem:[%s2732_s23 + $0xc4] sm:$0xf]  ;;  %v1770_v13 = vld [vmem:[%s2732_s23 + $0xc8] sm:$0xf] }
 0x1b0   : >> { %1767 = vst [vmem:[%s2728_s17 + $0xc0] sm:$0xf] %v1766_v11  ;;  %1769 = vst [vmem:[%s2728_s17 + $0xc4] sm:$0xf] %v1768_v12  ;;  %v1772_v14 = vld [vmem:[%s2732_s23 + $0xcc] sm:$0xf] }
 0x1b1   : >> { %1771 = vst [vmem:[%s2728_s17 + $0xc8] sm:$0xf] %v1770_v13  ;;  %v1774_v16 = vld [vmem:[%s2732_s23 + $0xd0] sm:$0xf]  ;;  %v1776_v18 = vld [vmem:[%s2732_s23 + $0xd4] sm:$0xf] }
 0x1b2   : >> { %1773 = vst [vmem:[%s2728_s17 + $0xcc] sm:$0xf] %v1772_v14  ;;  %1775 = vst [vmem:[%s2728_s17 + $0xd0] sm:$0xf] %v1774_v16  ;;  %v1778_v19 = vld [vmem:[%s2732_s23 + $0xd8] sm:$0xf] }
 0x1b3   : >> { %1777 = vst [vmem:[%s2728_s17 + $0xd4] sm:$0xf] %v1776_v18  ;;  %v1780_v20 = vld [vmem:[%s2732_s23 + $0xdc] sm:$0xf]  ;;  %v1782_v21 = vld [vmem:[%s2732_s23 + $0xe0] sm:$0xf] }
 0x1b4   : >> { %1779 = vst [vmem:[%s2728_s17 + $0xd8] sm:$0xf] %v1778_v19  ;;  %1781 = vst [vmem:[%s2728_s17 + $0xdc] sm:$0xf] %v1780_v20  ;;  %v1784_v22 = vld [vmem:[%s2732_s23 + $0xe4] sm:$0xf] }
 0x1b5   : >> { %1783 = vst [vmem:[%s2728_s17 + $0xe0] sm:$0xf] %v1782_v21  ;;  %v1786_v23 = vld [vmem:[%s2732_s23 + $0xe8] sm:$0xf]  ;;  %v1788_v24 = vld [vmem:[%s2732_s23 + $0xec] sm:$0xf] }
 0x1b6   : >> { %1785 = vst [vmem:[%s2728_s17 + $0xe4] sm:$0xf] %v1784_v22  ;;  %1787 = vst [vmem:[%s2728_s17 + $0xe8] sm:$0xf] %v1786_v23  ;;  %v1790_v25 = vld [vmem:[%s2732_s23 + $0xf0] sm:$0xf] }
 0x1b7   : >> { %1789 = vst [vmem:[%s2728_s17 + $0xec] sm:$0xf] %v1788_v24  ;;  %v1792_v26 = vld [vmem:[%s2732_s23 + $0xf4] sm:$0xf]  ;;  %v1794_v27 = vld [vmem:[%s2732_s23 + $0xf8] sm:$0xf] }
 0x1b8   : >> { %1791 = vst [vmem:[%s2728_s17 + $0xf0] sm:$0xf] %v1790_v25  ;;  %1793 = vst [vmem:[%s2728_s17 + $0xf4] sm:$0xf] %v1792_v26  ;;  %v1796_v28 = vld [vmem:[%s2732_s23 + $0xfc] sm:$0xf] }
 0x1b9   : >> { %1795 = vst [vmem:[%s2728_s17 + $0xf8] sm:$0xf] %v1794_v27  ;;  %1797 = vst [vmem:[%s2728_s17 + $0xfc] sm:$0xf] %v1796_v28  ;;  %s3455_s5 = smov (%p1799_p12, %s1798_s5), 0  ;;  %s1664_s30 = sadd.s32 1, %s2740_s30  }
 0x1ba   : >> { %s2344_s7 = sshll.u32 %s3455_s5, 8  ;;  %p1663_p13 = scmp.ge.s32.totalorder %s1664_s30, %s3246_s29 }
 0x1bb   : >> { %s1803_s23 = scalar_lea.vmem %s2983_s15, %s2344_s7 [#allocation2]   ;;  %s1804_s17 = scalar_lea.vmem %s3240_s27, %s2344_s7  }
 0x1bc   : >> { %s3445_s6 = smov %s3455_s5  ;;  %1666 = sbr.rel (!%p1663_p13) target bundleno = 399 (0x18f), region = 131 }
 0x1c1 PF: > { %s3414_s8 = sand.u32 63, %s3453_s20   ;;  %s2420_s9 = sshll.u32 %s3246_s29, 8 }
 0x1c2   : > { %s1809_s10 = scalar_lea.vmem %s2983_s15, %s2420_s9 [#allocation2]   ;;  %s1811_s11 = scalar_lea.vmem %s3240_s27, %s2420_s9  }
 0x1c3   : > { %p2349_p0 = scmp.le.s32.totalorder %s3414_s8, 0 }
 0x1c4   : > { %s2742_s12 = smov (!%p2349_p0), %s1811_s11   ;;  %s2746_s14 = smov (!%p2349_p0), %s1809_s10  }
 0x1c5   : > { %2088 = sbr.rel (%p2349_p0) target bundleno = 466 (0x1d2), region = 136  ;;  %s2750_s13 = smov (!%p2349_p0), 0  }
 0x1c6   : > { %s2754_s22 = smov (!%p2349_p0), 0  }
 0x1ca LB: >> { %v1821_v15 = vld [vmem:[%s2748_s14] sm:$0xf]  ;;  %s1823_s20 = sadd.s32 1, %s2752_s13  ;;  %s1815_s22 = sadd.s32 1, %s2756_s22   ;;  %s2756_s22 = sphi %s2754_s22, %s1815_s22   ;;  %s2752_s13 = sphi %s2750_s13, %s2751_s13   ;;  %s2748_s14 = sphi %s2746_s14, %s1828_s14   ;;  %s2744_s12 = sphi %s2742_s12, %s1829_s12  }
 0x1cb   : >> { %1822 = vst [vmem:[%s2744_s12] sm:$0xf] %v1821_v15  ;;  %p1824_p1 = scmp.ge.s32.totalorder %s1823_s20, %s3414_s8  ;;  %p1814_p2 = scmp.ge.s32.totalorder %s1815_s22, %s3414_s8 }
 0x1cd   : >> { %s3457_s20 = smov (%p1824_p1, %s1823_s20), 0  ;;  %1817 = sbr.rel (!%p1814_p2) target bundleno = 458 (0x1ca), region = 142 }
 0x1ce   : >> { %s2350_s15 = sshll.u32 %s3457_s20, 2  ;;  %s2751_s13 = smov %s3457_s20  }
 0x1cf   : >> { %s1828_s14 = scalar_lea.vmem %s1809_s10, %s2350_s15 [#allocation2]   ;;  %s1829_s12 = scalar_lea.vmem %s1811_s11, %s2350_s15  }
 0x1d2 PF: > { %s14_s19 = sadd.s32 1, %s2724_s19   ;;  %s3446_s15 = smov %s2712_s16 }
 0x1d3   : > { %p11_p3 = scmp.ge.s32.totalorder %s14_s19, 35   ;;  %s3447_s16 = smov %s2826_s25 }
 0x1d4   : > { %s3448_s17 = smov %s2720_s18  ;;  %s3449_s18 = smov %s3451_s21 }
 0x1d5   :  { %13 = sbr.rel (!%p11_p3) target bundleno = 3 (0x3), region = 153 }

</bundles_post_ra>
